<compile_context>
chip_gen: v7x
topology: tpu7x:2x2x1
jax: 0.10.0
libtpu: 0.0.40
codegen_flags: <defaults>
</compile_context>

<pallas_src>
import functools

import jax
import jax.numpy as jnp
from jax.experimental import pallas as pl
from jax.experimental.pallas import tpu as pltpu


# ----------------------------------------------------------------------------
# Helpers: padding plan, tile picking, generation-aware budgets
# ----------------------------------------------------------------------------
def _round_up(n, m):
    return ((n + m - 1) // m) * m


def _pick_tile(extent, max_tile, gran):
    """Largest multiple of `gran` that divides `extent` and is <= max_tile."""
    t = (min(max_tile, extent) // gran) * gran
    t = max(t, gran)
    while extent % t != 0:
        t -= gran
    return t


def _vmem_limit_bytes():
    """Generation-aware VMEM budget: ~48 MiB on v7x (64 MiB/TC), ~100 MiB on v5e/v6e."""
    cap = 64 * 1024 * 1024
    try:
        cap = int(getattr(pltpu.get_tpu_info(), "vmem_capacity_bytes", cap))
    except Exception:
        pass
    return int(min(100 << 20, max(32 << 20, cap - (16 << 20))))


def _default_block_sizes(vmem_limit):
    if vmem_limit >= (96 << 20):      # v5e / v6e (128 MiB VMEM): larger tiles
        return 512, 1024, 1024
    return 256, 512, 512              # v7x (64 MiB per TensorCore)


def make_plan(node_counts, feat_dims, *, block_dst=None, block_src=None,
              block_feat=None):
    """node_counts: nodes per hop [n_src_layer0, ..., n_dst_last]; feat_dims: [fin, ..., fout_last]."""
    vmem_limit = _vmem_limit_bytes()
    bd, bs, bf = _default_block_sizes(vmem_limit)
    block_dst = block_dst or bd
    block_src = block_src or bs
    block_feat = block_feat or bf

    levels = [_round_up(c, 128) for c in node_counts]   # node extents, 128-padded
    feats = [_round_up(f, 128) for f in feat_dims]      # feature extents, 128-padded

    layers = []
    for l in range(len(node_counts) - 1):
        n_src, n_dst = node_counts[l], node_counts[l + 1]
        assert n_dst <= n_src, "block dst nodes must be a prefix of src nodes"
        n_src_p, n_dst_p = levels[l], levels[l + 1]
        fin_p, fout_p = feats[l], feats[l + 1]
        tk = _pick_tile(n_src_p, block_src, 128)
        # keep >=2 dst tiles when possible so both v7x TensorCores get work
        tm = _pick_tile(n_dst_p, min(block_dst, max(8, n_dst_p // 2)), 8)
        tf = _pick_tile(fin_p, block_feat, 128)
        layers.append(dict(n_src=n_src, n_dst=n_dst,
                           fin=feat_dims[l], fout=feat_dims[l + 1],
                           n_src_p=n_src_p, n_dst_p=n_dst_p,
                           fin_p=fin_p, fout_p=fout_p, tm=tm, tk=tk, tf=tf))
    return dict(layers=layers, vmem_limit=vmem_limit)


# ----------------------------------------------------------------------------
# Kernel 1: neighbor projection  P_neigh = H_src @ W_neigh   (W VMEM-resident)
#   grid = (src-row tiles [parallel], in-feature reduction tiles [arbitrary])
# ----------------------------------------------------------------------------
def _proj_kernel(h_ref, w_ref, out_ref, acc_ref, *, tf):
    k = pl.program_id(1)

    @pl.when(k == 0)
    def _():
        acc_ref[...] = jnp.zeros_like(acc_ref)

    off = pl.multiple_of(k * tf, tf)
    acc_ref[...] += jnp.dot(h_ref[...], w_ref[pl.ds(off, tf), :],
                            preferred_element_type=jnp.float32)

    @pl.when(k == pl.num_programs(1) - 1)
    def _():
        out_ref[...] = acc_ref[...].astype(out_ref.dtype)


# ----------------------------------------------------------------------------
# Kernel 2: mean aggregation + fused self-projection + bias (+ relu)
#   out[i] = deg_inv[i] * sum_k M[i,k] @ P_neigh[k] + H_dst[i] @ W_self + b
#   grid = (dst-row tiles [parallel], src reduction tiles [arbitrary, last])
# ----------------------------------------------------------------------------
def _agg_kernel(mask_ref, p_ref, h_dst_ref, w_self_ref, deg_ref, b_ref,
                out_ref, acc_ref, *, apply_relu, p_resident, tk):
    k = pl.program_id(1)

    @pl.when(k == 0)
    def _():
        acc_ref[...] = jnp.zeros_like(acc_ref)

    if p_resident:                      # P_neigh fully VMEM-resident: slice in-kernel
        off = pl.multiple_of(k * tk, tk)
        p_tile = p_ref[pl.ds(off, tk), :]
    else:                               # streamed tile (k, 0)
        p_tile = p_ref[...]
    acc_ref[...] += jnp.dot(mask_ref[...], p_tile,
                            preferred_element_type=jnp.float32)

    @pl.when(k == pl.num_programs(1) - 1)
    def _():
        self_proj = jnp.dot(h_dst_ref[...], w_self_ref[...],
                            preferred_element_type=jnp.float32)
        out = deg_ref[...] * acc_ref[...] + self_proj + b_ref[...]
        if apply_relu:
            out = jnp.maximum(out, 0.0)
        # TODO(synk): training-mode dropout would use pltpu.prng_seed +
        # pltpu.stateful_bernoulli here; identity in eval mode.
        out_ref[...] = out.astype(out_ref.dtype)


# ----------------------------------------------------------------------------
# One SAGEConv('mean') layer on pre-padded inputs.
# ----------------------------------------------------------------------------
def sage_conv_pallas(mask_p, deg_inv_p, h_p, w_neigh_p, w_self_p, bias_p, *,
                     n_dst_p, n_src_p, fin_p, fout_p, tm, tk, tf,
                     apply_relu, out_dtype, vmem_limit):
    assert h_p.shape == (n_src_p, fin_p)
    assert mask_p.shape == (n_dst_p, n_src_p)

    cparams = pltpu.CompilerParams(
        dimension_semantics=("parallel", "arbitrary"),
        vmem_limit_bytes=vmem_limit)

    # ---- 1) P_neigh = H_src @ W_neigh (W resident, fin reduction tiled) ----
    p_neigh = pl.pallas_call(
        functools.partial(_proj_kernel, tf=tf),
        out_shape=jax.ShapeDtypeStruct((n_src_p, fout_p), jnp.bfloat16),
        grid=(n_src_p // tk, fin_p // tf),
        in_specs=[
            pl.BlockSpec((tk, tf), lambda i, k: (i, k)),          # H tile
            pl.BlockSpec((fin_p, fout_p), lambda i, k: (0, 0)),   # W_neigh resident
        ],
        out_specs=pl.BlockSpec((tk, fout_p), lambda i, k: (i, 0)),
        scratch_shapes=[pltpu.VMEM((tk, fout_p), jnp.float32)],
        compiler_params=cparams,
    )(h_p, w_neigh_p)

    # ---- 2) out = deg_inv * (M @ P_neigh) + H_dst @ W_self + b (+ relu) ----
    p_resident = (n_src_p * fout_p * 2) <= (vmem_limit // 4)
    if p_resident:
        p_spec = pl.BlockSpec((n_src_p, fout_p), lambda i, k: (0, 0))
    else:
        p_spec = pl.BlockSpec((tk, fout_p), lambda i, k: (k, 0))
    # TODO(synk): if the mask DMA stream is still exposed, try
    # pipeline_mode=pl.Buffered(3) on the mask BlockSpec.

    out_p = pl.pallas_call(
        functools.partial(_agg_kernel, apply_relu=apply_relu,
                          p_resident=p_resident, tk=tk),
        out_shape=jax.ShapeDtypeStruct((n_dst_p, fout_p), out_dtype),
        grid=(n_dst_p // tm, n_src_p // tk),
        in_specs=[
            pl.BlockSpec((tm, tk), lambda i, k: (i, k)),          # binary mask (bf16)
            p_spec,                                               # P_neigh
            pl.BlockSpec((tm, fin_p), lambda i, k: (i, 0)),       # H_dst rows
            pl.BlockSpec((fin_p, fout_p), lambda i, k: (0, 0)),   # W_self resident
            pl.BlockSpec((tm, 1), lambda i, k: (i, 0)),           # 1/deg (f32)
            pl.BlockSpec((1, fout_p), lambda i, k: (0, 0)),       # bias  (f32)
        ],
        out_specs=pl.BlockSpec((tm, fout_p), lambda i, k: (i, 0)),
        scratch_shapes=[pltpu.VMEM((tm, fout_p), jnp.float32)],
        compiler_params=cparams,
    )(mask_p, p_neigh, h_p, w_self_p, deg_inv_p, bias_p)

    # TODO(synk): for very sparse blocks (avg degree << n_src), replace the dense mask
    # with a scalar-prefetch row-gather kernel (PrefetchScalarGridSpec) -> O(edges).
    return out_p


# ----------------------------------------------------------------------------
# One-time preparation (padding + casts happen ONCE, outside the layer path)
# ----------------------------------------------------------------------------
def init_sage_params(key, in_feats, n_hidden, n_classes, n_layers):
    dims_in = [in_feats] + [n_hidden] * (n_layers - 1)
    dims_out = [n_hidden] * (n_layers - 1) + [n_classes]
    params = []
    for din, dout in zip(dims_in, dims_out):
        k1, k2, key = jax.random.split(key, 3)
        scale = 1.0 / jnp.sqrt(jnp.float32(din))
        params.append({
            "w_self": jax.random.normal(k1, (din, dout), jnp.float32) * scale,
            "w_neigh": jax.random.normal(k2, (din, dout), jnp.float32) * scale,
            "bias": jnp.zeros((dout,), jnp.float32),
        })
    return params


def prepare_params(params, plan):
    out = []
    for p, lp in zip(params, plan["layers"]):
        fin, fout, fin_p, fout_p = lp["fin"], lp["fout"], lp["fin_p"], lp["fout_p"]
        pad = ((0, fin_p - fin), (0, fout_p - fout))
        out.append({
            "w_self": jnp.pad(p["w_self"], pad).astype(jnp.bfloat16),
            "w_neigh": jnp.pad(p["w_neigh"], pad).astype(jnp.bfloat16),
            "bias": jnp.pad(p["bias"].astype(jnp.float32),
                            (0, fout_p - fout)).reshape(1, fout_p),
        })
    return out


def prepare_blocks(masks, plan):
    """masks: dense binary adjacency [n_dst, n_src] per layer (dst = first n_dst src)."""
    out = []
    for mask, lp in zip(masks, plan["layers"]):
        n_dst, n_src = mask.shape
        mask = mask.astype(jnp.float32)
        deg_inv = 1.0 / jnp.maximum(mask.sum(axis=1, keepdims=True), 1.0)
        out.append({
            "mask": jnp.pad(mask, ((0, lp["n_dst_p"] - n_dst),
                                   (0, lp["n_src_p"] - n_src))).astype(jnp.bfloat16),
            "deg_inv": jnp.pad(deg_inv, ((0, lp["n_dst_p"] - n_dst), (0, 0))),
        })
    return out


def prepare_features(x, plan):
    lp = plan["layers"][0]
    n_src, fin = x.shape
    return jnp.pad(x, ((0, lp["n_src_p"] - n_src),
                       (0, lp["fin_p"] - fin))).astype(jnp.bfloat16)


# ----------------------------------------------------------------------------
# SAGE forward (mirrors the PyTorch module, eval mode). Activations stay padded
# between layers (no per-layer pad/cast passes); final output is sliced.
# ----------------------------------------------------------------------------
def sage_forward_pallas(plan, params_p, blocks_p, x_p):
    h = x_p
    n_layers = len(plan["layers"])
    for l, (lp, pp, bp) in enumerate(zip(plan["layers"], params_p, blocks_p)):
        last = (l == n_layers - 1)
        h = sage_conv_pallas(
            bp["mask"], bp["deg_inv"], h, pp["w_neigh"], pp["w_self"], pp["bias"],
            n_dst_p=lp["n_dst_p"], n_src_p=lp["n_src_p"],
            fin_p=lp["fin_p"], fout_p=lp["fout_p"],
            tm=lp["tm"], tk=lp["tk"], tf=lp["tf"],
            apply_relu=not last,
            out_dtype=jnp.float32 if last else jnp.bfloat16,
            vmem_limit=plan["vmem_limit"])
    last_lp = plan["layers"][-1]
    return h[: last_lp["n_dst"], : last_lp["fout"]]


# ----------------------------------------------------------------------------
# Pure-JAX references
# ----------------------------------------------------------------------------
def sage_ref_f32(params, masks, x):
    """Full-f32 reference (the PyTorch module's math, mean aggregator)."""
    h = x
    for l, (p, mask) in enumerate(zip(params, masks)):
        n_dst = mask.shape[0]
        deg_inv = 1.0 / jnp.maximum(mask.sum(axis=1, keepdims=True), 1.0)
        h = h[:n_dst] @ p["w_self"] + (deg_inv * (mask @ h)) @ p["w_neigh"] + p["bias"]
        if l != len(params) - 1:
            h = jnp.maximum(h, 0.0)
    return h


def sage_ref_mixed(params, masks, x):
    """Reference mirroring the kernel's bf16 inputs / f32 accumulation / f32 deg scaling."""
    bf = lambda a: a.astype(jnp.bfloat16)
    h = x.astype(jnp.float32)
    for l, (p, mask) in enumerate(zip(params, masks)):
        n_dst = mask.shape[0]
        deg_inv = 1.0 / jnp.maximum(mask.sum(axis=1, keepdims=True), 1.0)
        p_neigh = bf(jnp.dot(bf(h), bf(p["w_neigh"]), preferred_element_type=jnp.float32))
        neigh = deg_inv * jnp.dot(bf(mask), p_neigh, preferred_element_type=jnp.float32)
        self_p = jnp.dot(bf(h[:n_dst]), bf(p["w_self"]), preferred_element_type=jnp.float32)
        out = neigh + self_p + p["bias"]
        if l != len(params) - 1:
            out = jnp.maximum(out, 0.0).astype(jnp.bfloat16).astype(jnp.float32)
        h = out
    return h


# ----------------------------------------------------------------------------
# Example
# ----------------------------------------------------------------------------
if __name__ == "__main__":
    in_feats, n_hidden, n_classes, n_layers = 32, 32, 8, 3
    node_counts = [64, 32, 16, 8]          # nodes per hop: src ... -> dst

    key = jax.random.PRNGKey(0)
    k_x, k_p, k_b = jax.random.split(key, 3)

    x = jax.random.normal(k_x, (node_counts[0], in_feats), jnp.float32)
    params = init_sage_params(k_p, in_feats, n_hidden, n_classes, n_layers)

    block_keys = jax.random.split(k_b, n_layers)
    masks = [(jax.random.uniform(block_keys[l],
                                 (node_counts[l + 1], node_counts[l])) < 0.3
              ).astype(jnp.float32) for l in range(n_layers)]

    feat_dims = [in_feats] + [n_hidden] * (n_layers - 1) + [n_classes]
    plan = make_plan(node_counts, feat_dims)

    # one-time pad/cast (outside the per-layer path)
    params_p = prepare_params(params, plan)
    blocks_p = prepare_blocks(masks, plan)
    x_p = prepare_features(x, plan)

    fwd = jax.jit(functools.partial(sage_forward_pallas, plan))
    out = fwd(params_p, blocks_p, x_p)
    jax.block_until_ready(out)

    # tight check vs. a reference with matching bf16/f32 mixed precision
    ref_mixed = sage_ref_mixed(params, masks, x)
    assert jnp.allclose(out, ref_mixed, atol=1e-2, rtol=1e-2), \
        float(jnp.max(jnp.abs(out - ref_mixed)))

    # loose semantic check vs. the original full-f32 formulation
    ref_f32 = sage_ref_f32(params, masks, x)
    rel_err = float(jnp.linalg.norm(out - ref_f32) / jnp.linalg.norm(ref_f32))
    assert rel_err < 0.05, rel_err

    print("KERNEL_OK")
</pallas_src>

<mosaic_0001>
module attributes {stable_mosaic.version = 11 : i64} {
  func.func @_proj_kernel(%arg0: i32, %arg1: i32, %arg2: memref<128x128xbf16, #tpu.memory_space<vmem>>, %arg3: memref<128x128xbf16, #tpu.memory_space<vmem>>, %arg4: memref<128x128xbf16, #tpu.memory_space<vmem>>, %arg5: memref<128x128xf32, #tpu.memory_space<vmem>>) attributes {dimension_semantics = [#tpu.dimension_semantics<parallel>, #tpu.dimension_semantics<arbitrary>], iteration_bounds = array<i64: 1, 1>, scalar_prefetch = 0 : i64, scratch_operands = 1 : i64, tpu.core_type = #tpu.core_type<tc>, window_params = [{transform_indices = @transform_0, window_bounds = array<i64: 128, 128>}, {pipeline_mode = #tpu.pipeline_mode<synchronous>, transform_indices = @transform_1, window_bounds = array<i64: 128, 128>}, {transform_indices = @transform_2, window_bounds = array<i64: 128, 128>}]} {
    %c0_i32 = arith.constant 0 : i32
    %0 = arith.cmpi eq, %arg1, %c0_i32 : i32
    %1 = arith.extui %0 : i1 to i32
    %c0_i32_0 = arith.constant 0 : i32
    %2 = arith.cmpi ne, %1, %c0_i32_0 : i32
    scf.if %2 {
      %cst_9 = arith.constant 0.000000e+00 : f32
      %15 = vector.broadcast %cst_9 : f32 to vector<128x128xf32>
      %c0_10 = arith.constant 0 : index
      %c0_11 = arith.constant 0 : index
      %16 = vector.load %arg5[%c0_10, %c0_11] : memref<128x128xf32, #tpu.memory_space<vmem>>, vector<128x128xf32>
      tpu.vector_store %arg5[%c0_10, %c0_11], %15 {strides = array<i32>} : memref<128x128xf32, #tpu.memory_space<vmem>>, vector<128x128xf32>,
    } else {
    }
    %c128_i32 = arith.constant 128 : i32
    %3 = arith.muli %arg1, %c128_i32 : i32
    %4 = tpu.assume_multiple %3, 128 : i32
    %c0 = arith.constant 0 : index
    %c0_1 = arith.constant 0 : index
    %5 = vector.load %arg5[%c0, %c0_1] : memref<128x128xf32, #tpu.memory_space<vmem>>, vector<128x128xf32>
    %c0_2 = arith.constant 0 : index
    %c0_3 = arith.constant 0 : index
    %6 = vector.load %arg2[%c0_2, %c0_3] : memref<128x128xbf16, #tpu.memory_space<vmem>>, vector<128x128xbf16>
    %7 = arith.index_cast %4 : i32 to index
    %c0_4 = arith.constant 0 : index
    %8 = vector.load %arg3[%7, %c0_4] : memref<128x128xbf16, #tpu.memory_space<vmem>>, vector<128x128xbf16>
    %cst = arith.constant dense<0.000000e+00> : vector<128x128xf32>
    %9 = tpu.matmul %6, %8, %cst {dimension_numbers = #tpu.dot_dimension_numbers<[1], [0], [0], [1], [0, 0, 1, 1], [], []>} : vector<128x128xbf16>, vector<128x128xbf16>, vector<128x128xf32> -> vector<128x128xf32>
    %10 = arith.addf %5, %9 : vector<128x128xf32>
    %c0_5 = arith.constant 0 : index
    %c0_6 = arith.constant 0 : index
    %11 = vector.load %arg5[%c0_5, %c0_6] : memref<128x128xf32, #tpu.memory_space<vmem>>, vector<128x128xf32>
    tpu.vector_store %arg5[%c0_5, %c0_6], %10 {strides = array<i32>} : memref<128x128xf32, #tpu.memory_space<vmem>>, vector<128x128xf32>,
    %c0_i32_7 = arith.constant 0 : i32
    %12 = arith.cmpi eq, %arg1, %c0_i32_7 : i32
    %13 = arith.extui %12 : i1 to i32
    %c0_i32_8 = arith.constant 0 : i32
    %14 = arith.cmpi ne, %13, %c0_i32_8 : i32
    scf.if %14 {
      %c0_9 = arith.constant 0 : index
      %c0_10 = arith.constant 0 : index
      %15 = vector.load %arg5[%c0_9, %c0_10] : memref<128x128xf32, #tpu.memory_space<vmem>>, vector<128x128xf32>
      %16 = arith.truncf %15 : vector<128x128xf32> to vector<128x128xbf16>
      %c0_11 = arith.constant 0 : index
      %c0_12 = arith.constant 0 : index
      %17 = vector.load %arg4[%c0_11, %c0_12] : memref<128x128xbf16, #tpu.memory_space<vmem>>, vector<128x128xbf16>
      tpu.vector_store %arg4[%c0_11, %c0_12], %16 {strides = array<i32>} : memref<128x128xbf16, #tpu.memory_space<vmem>>, vector<128x128xbf16>,
    } else {
    }
    return
  }
  func.func @transform_0(%arg0: i32, %arg1: i32) -> (i32, i32) {
    %c0_i32 = arith.constant 0 : i32
    return %arg0, %arg1 : i32, i32
  }
  func.func @transform_1(%arg0: i32, %arg1: i32) -> (i32, i32) {
    %c0_i32 = arith.constant 0 : i32
    %c0_i32_0 = arith.constant 0 : i32
    %c0_i32_1 = arith.constant 0 : i32
    return %c0_i32, %c0_i32_0 : i32, i32
  }
  func.func @transform_2(%arg0: i32, %arg1: i32) -> (i32, i32) {
    %c0_i32 = arith.constant 0 : i32
    %c0_i32_0 = arith.constant 0 : i32
    return %arg0, %c0_i32 : i32, i32
  }
}

module attributes {stable_mosaic.version = 11 : i64} {
  func.func @_agg_kernel(%arg0: i32, %arg1: i32, %arg2: memref<64x128xbf16, #tpu.memory_space<vmem>>, %arg3: memref<128x128xbf16, #tpu.memory_space<vmem>>, %arg4: memref<64x128xbf16, #tpu.memory_space<vmem>>, %arg5: memref<128x128xbf16, #tpu.memory_space<vmem>>, %arg6: memref<64x1xf32, #tpu.memory_space<vmem>>, %arg7: memref<1x128xf32, #tpu.memory_space<vmem>>, %arg8: memref<64x128xbf16, #tpu.memory_space<vmem>>, %arg9: memref<64x128xf32, #tpu.memory_space<vmem>>) attributes {dimension_semantics = [#tpu.dimension_semantics<parallel>, #tpu.dimension_semantics<arbitrary>], iteration_bounds = array<i64: 2, 1>, scalar_prefetch = 0 : i64, scratch_operands = 1 : i64, tpu.core_type = #tpu.core_type<tc>, window_params = [{transform_indices = @transform_0, window_bounds = array<i64: 64, 128>}, {pipeline_mode = #tpu.pipeline_mode<synchronous>, transform_indices = @transform_1, window_bounds = array<i64: 128, 128>}, {transform_indices = @transform_2, window_bounds = array<i64: 64, 128>}, {pipeline_mode = #tpu.pipeline_mode<synchronous>, transform_indices = @transform_3, window_bounds = array<i64: 128, 128>}, {transform_indices = @transform_4, window_bounds = array<i64: 64, 1>}, {pipeline_mode = #tpu.pipeline_mode<synchronous>, transform_indices = @transform_5, window_bounds = array<i64: 1, 128>}, {transform_indices = @transform_6, window_bounds = array<i64: 64, 128>}]} {
    %c0_i32 = arith.constant 0 : i32
    %0 = arith.cmpi eq, %arg1, %c0_i32 : i32
    %1 = arith.extui %0 : i1 to i32
    %c0_i32_0 = arith.constant 0 : i32
    %2 = arith.cmpi ne, %1, %c0_i32_0 : i32
    scf.if %2 {
      %cst_9 = arith.constant 0.000000e+00 : f32
      %15 = vector.broadcast %cst_9 : f32 to vector<64x128xf32>
      %c0_10 = arith.constant 0 : index
      %c0_11 = arith.constant 0 : index
      %16 = vector.load %arg9[%c0_10, %c0_11] : memref<64x128xf32, #tpu.memory_space<vmem>>, vector<64x128xf32>
      tpu.vector_store %arg9[%c0_10, %c0_11], %15 {strides = array<i32>} : memref<64x128xf32, #tpu.memory_space<vmem>>, vector<64x128xf32>,
    } else {
    }
    %c128_i32 = arith.constant 128 : i32
    %3 = arith.muli %arg1, %c128_i32 : i32
    %4 = tpu.assume_multiple %3, 128 : i32
    %5 = arith.index_cast %4 : i32 to index
    %c0 = arith.constant 0 : index
    %6 = vector.load %arg3[%5, %c0] : memref<128x128xbf16, #tpu.memory_space<vmem>>, vector<128x128xbf16>
    %c0_1 = arith.constant 0 : index
    %c0_2 = arith.constant 0 : index
    %7 = vector.load %arg9[%c0_1, %c0_2] : memref<64x128xf32, #tpu.memory_space<vmem>>, vector<64x128xf32>
    %c0_3 = arith.constant 0 : index
    %c0_4 = arith.constant 0 : index
    %8 = vector.load %arg2[%c0_3, %c0_4] : memref<64x128xbf16, #tpu.memory_space<vmem>>, vector<64x128xbf16>
    %cst = arith.constant dense<0.000000e+00> : vector<64x128xf32>
    %9 = tpu.matmul %8, %6, %cst {dimension_numbers = #tpu.dot_dimension_numbers<[1], [0], [0], [1], [0, 0, 1, 1], [], []>} : vector<64x128xbf16>, vector<128x128xbf16>, vector<64x128xf32> -> vector<64x128xf32>
    %10 = arith.addf %7, %9 : vector<64x128xf32>
    %c0_5 = arith.constant 0 : index
    %c0_6 = arith.constant 0 : index
    %11 = vector.load %arg9[%c0_5, %c0_6] : memref<64x128xf32, #tpu.memory_space<vmem>>, vector<64x128xf32>
    tpu.vector_store %arg9[%c0_5, %c0_6], %10 {strides = array<i32>} : memref<64x128xf32, #tpu.memory_space<vmem>>, vector<64x128xf32>,
    %c0_i32_7 = arith.constant 0 : i32
    %12 = arith.cmpi eq, %arg1, %c0_i32_7 : i32
    %13 = arith.extui %12 : i1 to i32
    %c0_i32_8 = arith.constant 0 : i32
    %14 = arith.cmpi ne, %13, %c0_i32_8 : i32
    scf.if %14 {
      %c0_9 = arith.constant 0 : index
      %c0_10 = arith.constant 0 : index
      %15 = vector.load %arg4[%c0_9, %c0_10] : memref<64x128xbf16, #tpu.memory_space<vmem>>, vector<64x128xbf16>
      %c0_11 = arith.constant 0 : index
      %c0_12 = arith.constant 0 : index
      %16 = vector.load %arg5[%c0_11, %c0_12] : memref<128x128xbf16, #tpu.memory_space<vmem>>, vector<128x128xbf16>
      %cst_13 = arith.constant dense<0.000000e+00> : vector<64x128xf32>
      %17 = tpu.matmul %15, %16, %cst_13 {dimension_numbers = #tpu.dot_dimension_numbers<[1], [0], [0], [1], [0, 0, 1, 1], [], []>} : vector<64x128xbf16>, vector<128x128xbf16>, vector<64x128xf32> -> vector<64x128xf32>
      %c0_14 = arith.constant 0 : index
      %c0_15 = arith.constant 0 : index
      %18 = vector.load %arg6[%c0_14, %c0_15] : memref<64x1xf32, #tpu.memory_space<vmem>>, vector<64x1xf32>
      %c0_16 = arith.constant 0 : index
      %c0_17 = arith.constant 0 : index
      %19 = vector.load %arg9[%c0_16, %c0_17] : memref<64x128xf32, #tpu.memory_space<vmem>>, vector<64x128xf32>
      %20 = vector.broadcast %18 : vector<64x1xf32> to vector<64x128xf32>
      %21 = arith.mulf %20, %19 : vector<64x128xf32>
      %22 = arith.addf %21, %17 : vector<64x128xf32>
      %c0_18 = arith.constant 0 : index
      %c0_19 = arith.constant 0 : index
      %23 = vector.load %arg7[%c0_18, %c0_19] : memref<1x128xf32, #tpu.memory_space<vmem>>, vector<1x128xf32>
      %24 = vector.broadcast %23 : vector<1x128xf32> to vector<64x128xf32>
      %25 = arith.addf %22, %24 : vector<64x128xf32>
      %cst_20 = arith.constant 0.000000e+00 : f32
      %26 = vector.broadcast %cst_20 : f32 to vector<64x128xf32>
      %27 = arith.maximumf %25, %26 : vector<64x128xf32>
      %28 = arith.truncf %27 : vector<64x128xf32> to vector<64x128xbf16>
      %c0_21 = arith.constant 0 : index
      %c0_22 = arith.constant 0 : index
      %29 = vector.load %arg8[%c0_21, %c0_22] : memref<64x128xbf16, #tpu.memory_space<vmem>>, vector<64x128xbf16>
      tpu.vector_store %arg8[%c0_21, %c0_22], %28 {strides = array<i32>} : memref<64x128xbf16, #tpu.memory_space<vmem>>, vector<64x128xbf16>,
    } else {
    }
    return
  }
  func.func @transform_0(%arg0: i32, %arg1: i32) -> (i32, i32) {
    %c0_i32 = arith.constant 0 : i32
    return %arg0, %arg1 : i32, i32
  }
  func.func @transform_1(%arg0: i32, %arg1: i32) -> (i32, i32) {
    %c0_i32 = arith.constant 0 : i32
    %c0_i32_0 = arith.constant 0 : i32
    %c0_i32_1 = arith.constant 0 : i32
    return %c0_i32, %c0_i32_0 : i32, i32
  }
  func.func @transform_2(%arg0: i32, %arg1: i32) -> (i32, i32) {
    %c0_i32 = arith.constant 0 : i32
    %c0_i32_0 = arith.constant 0 : i32
    return %arg0, %c0_i32 : i32, i32
  }
  func.func @transform_3(%arg0: i32, %arg1: i32) -> (i32, i32) {
    %c0_i32 = arith.constant 0 : i32
    %c0_i32_0 = arith.constant 0 : i32
    %c0_i32_1 = arith.constant 0 : i32
    return %c0_i32, %c0_i32_0 : i32, i32
  }
  func.func @transform_4(%arg0: i32, %arg1: i32) -> (i32, i32) {
    %c0_i32 = arith.constant 0 : i32
    %c0_i32_0 = arith.constant 0 : i32
    return %arg0, %c0_i32 : i32, i32
  }
  func.func @transform_5(%arg0: i32, %arg1: i32) -> (i32, i32) {
    %c0_i32 = arith.constant 0 : i32
    %c0_i32_0 = arith.constant 0 : i32
    %c0_i32_1 = arith.constant 0 : i32
    return %c0_i32, %c0_i32_0 : i32, i32
  }
  func.func @transform_6(%arg0: i32, %arg1: i32) -> (i32, i32) {
    %c0_i32 = arith.constant 0 : i32
    %c0_i32_0 = arith.constant 0 : i32
    return %arg0, %c0_i32 : i32, i32
  }
}

module attributes {stable_mosaic.version = 11 : i64} {
  func.func @_proj_kernel(%arg0: i32, %arg1: i32, %arg2: memref<128x128xbf16, #tpu.memory_space<vmem>>, %arg3: memref<128x128xbf16, #tpu.memory_space<vmem>>, %arg4: memref<128x128xbf16, #tpu.memory_space<vmem>>, %arg5: memref<128x128xf32, #tpu.memory_space<vmem>>) attributes {dimension_semantics = [#tpu.dimension_semantics<parallel>, #tpu.dimension_semantics<arbitrary>], iteration_bounds = array<i64: 1, 1>, scalar_prefetch = 0 : i64, scratch_operands = 1 : i64, tpu.core_type = #tpu.core_type<tc>, window_params = [{transform_indices = @transform_0, window_bounds = array<i64: 128, 128>}, {pipeline_mode = #tpu.pipeline_mode<synchronous>, transform_indices = @transform_1, window_bounds = array<i64: 128, 128>}, {transform_indices = @transform_2, window_bounds = array<i64: 128, 128>}]} {
    %c0_i32 = arith.constant 0 : i32
    %0 = arith.cmpi eq, %arg1, %c0_i32 : i32
    %1 = arith.extui %0 : i1 to i32
    %c0_i32_0 = arith.constant 0 : i32
    %2 = arith.cmpi ne, %1, %c0_i32_0 : i32
    scf.if %2 {
      %cst_9 = arith.constant 0.000000e+00 : f32
      %15 = vector.broadcast %cst_9 : f32 to vector<128x128xf32>
      %c0_10 = arith.constant 0 : index
      %c0_11 = arith.constant 0 : index
      %16 = vector.load %arg5[%c0_10, %c0_11] : memref<128x128xf32, #tpu.memory_space<vmem>>, vector<128x128xf32>
      tpu.vector_store %arg5[%c0_10, %c0_11], %15 {strides = array<i32>} : memref<128x128xf32, #tpu.memory_space<vmem>>, vector<128x128xf32>,
    } else {
    }
    %c128_i32 = arith.constant 128 : i32
    %3 = arith.muli %arg1, %c128_i32 : i32
    %4 = tpu.assume_multiple %3, 128 : i32
    %c0 = arith.constant 0 : index
    %c0_1 = arith.constant 0 : index
    %5 = vector.load %arg5[%c0, %c0_1] : memref<128x128xf32, #tpu.memory_space<vmem>>, vector<128x128xf32>
    %c0_2 = arith.constant 0 : index
    %c0_3 = arith.constant 0 : index
    %6 = vector.load %arg2[%c0_2, %c0_3] : memref<128x128xbf16, #tpu.memory_space<vmem>>, vector<128x128xbf16>
    %7 = arith.index_cast %4 : i32 to index
    %c0_4 = arith.constant 0 : index
    %8 = vector.load %arg3[%7, %c0_4] : memref<128x128xbf16, #tpu.memory_space<vmem>>, vector<128x128xbf16>
    %cst = arith.constant dense<0.000000e+00> : vector<128x128xf32>
    %9 = tpu.matmul %6, %8, %cst {dimension_numbers = #tpu.dot_dimension_numbers<[1], [0], [0], [1], [0, 0, 1, 1], [], []>} : vector<128x128xbf16>, vector<128x128xbf16>, vector<128x128xf32> -> vector<128x128xf32>
    %10 = arith.addf %5, %9 : vector<128x128xf32>
    %c0_5 = arith.constant 0 : index
    %c0_6 = arith.constant 0 : index
    %11 = vector.load %arg5[%c0_5, %c0_6] : memref<128x128xf32, #tpu.memory_space<vmem>>, vector<128x128xf32>
    tpu.vector_store %arg5[%c0_5, %c0_6], %10 {strides = array<i32>} : memref<128x128xf32, #tpu.memory_space<vmem>>, vector<128x128xf32>,
    %c0_i32_7 = arith.constant 0 : i32
    %12 = arith.cmpi eq, %arg1, %c0_i32_7 : i32
    %13 = arith.extui %12 : i1 to i32
    %c0_i32_8 = arith.constant 0 : i32
    %14 = arith.cmpi ne, %13, %c0_i32_8 : i32
    scf.if %14 {
      %c0_9 = arith.constant 0 : index
      %c0_10 = arith.constant 0 : index
      %15 = vector.load %arg5[%c0_9, %c0_10] : memref<128x128xf32, #tpu.memory_space<vmem>>, vector<128x128xf32>
      %16 = arith.truncf %15 : vector<128x128xf32> to vector<128x128xbf16>
      %c0_11 = arith.constant 0 : index
      %c0_12 = arith.constant 0 : index
      %17 = vector.load %arg4[%c0_11, %c0_12] : memref<128x128xbf16, #tpu.memory_space<vmem>>, vector<128x128xbf16>
      tpu.vector_store %arg4[%c0_11, %c0_12], %16 {strides = array<i32>} : memref<128x128xbf16, #tpu.memory_space<vmem>>, vector<128x128xbf16>,
    } else {
    }
    return
  }
  func.func @transform_0(%arg0: i32, %arg1: i32) -> (i32, i32) {
    %c0_i32 = arith.constant 0 : i32
    return %arg0, %arg1 : i32, i32
  }
  func.func @transform_1(%arg0: i32, %arg1: i32) -> (i32, i32) {
    %c0_i32 = arith.constant 0 : i32
    %c0_i32_0 = arith.constant 0 : i32
    %c0_i32_1 = arith.constant 0 : i32
    return %c0_i32, %c0_i32_0 : i32, i32
  }
  func.func @transform_2(%arg0: i32, %arg1: i32) -> (i32, i32) {
    %c0_i32 = arith.constant 0 : i32
    %c0_i32_0 = arith.constant 0 : i32
    return %arg0, %c0_i32 : i32, i32
  }
}

module attributes {stable_mosaic.version = 11 : i64} {
  func.func @_agg_kernel(%arg0: i32, %arg1: i32, %arg2: memref<64x128xbf16, #tpu.memory_space<vmem>>, %arg3: memref<128x128xbf16, #tpu.memory_space<vmem>>, %arg4: memref<64x128xbf16, #tpu.memory_space<vmem>>, %arg5: memref<128x128xbf16, #tpu.memory_space<vmem>>, %arg6: memref<64x1xf32, #tpu.memory_space<vmem>>, %arg7: memref<1x128xf32, #tpu.memory_space<vmem>>, %arg8: memref<64x128xf32, #tpu.memory_space<vmem>>, %arg9: memref<64x128xf32, #tpu.memory_space<vmem>>) attributes {dimension_semantics = [#tpu.dimension_semantics<parallel>, #tpu.dimension_semantics<arbitrary>], iteration_bounds = array<i64: 2, 1>, scalar_prefetch = 0 : i64, scratch_operands = 1 : i64, tpu.core_type = #tpu.core_type<tc>, window_params = [{transform_indices = @transform_0, window_bounds = array<i64: 64, 128>}, {pipeline_mode = #tpu.pipeline_mode<synchronous>, transform_indices = @transform_1, window_bounds = array<i64: 128, 128>}, {transform_indices = @transform_2, window_bounds = array<i64: 64, 128>}, {pipeline_mode = #tpu.pipeline_mode<synchronous>, transform_indices = @transform_3, window_bounds = array<i64: 128, 128>}, {transform_indices = @transform_4, window_bounds = array<i64: 64, 1>}, {pipeline_mode = #tpu.pipeline_mode<synchronous>, transform_indices = @transform_5, window_bounds = array<i64: 1, 128>}, {transform_indices = @transform_6, window_bounds = array<i64: 64, 128>}]} {
    %c0_i32 = arith.constant 0 : i32
    %0 = arith.cmpi eq, %arg1, %c0_i32 : i32
    %1 = arith.extui %0 : i1 to i32
    %c0_i32_0 = arith.constant 0 : i32
    %2 = arith.cmpi ne, %1, %c0_i32_0 : i32
    scf.if %2 {
      %cst_9 = arith.constant 0.000000e+00 : f32
      %15 = vector.broadcast %cst_9 : f32 to vector<64x128xf32>
      %c0_10 = arith.constant 0 : index
      %c0_11 = arith.constant 0 : index
      %16 = vector.load %arg9[%c0_10, %c0_11] : memref<64x128xf32, #tpu.memory_space<vmem>>, vector<64x128xf32>
      tpu.vector_store %arg9[%c0_10, %c0_11], %15 {strides = array<i32>} : memref<64x128xf32, #tpu.memory_space<vmem>>, vector<64x128xf32>,
    } else {
    }
    %c128_i32 = arith.constant 128 : i32
    %3 = arith.muli %arg1, %c128_i32 : i32
    %4 = tpu.assume_multiple %3, 128 : i32
    %5 = arith.index_cast %4 : i32 to index
    %c0 = arith.constant 0 : index
    %6 = vector.load %arg3[%5, %c0] : memref<128x128xbf16, #tpu.memory_space<vmem>>, vector<128x128xbf16>
    %c0_1 = arith.constant 0 : index
    %c0_2 = arith.constant 0 : index
    %7 = vector.load %arg9[%c0_1, %c0_2] : memref<64x128xf32, #tpu.memory_space<vmem>>, vector<64x128xf32>
    %c0_3 = arith.constant 0 : index
    %c0_4 = arith.constant 0 : index
    %8 = vector.load %arg2[%c0_3, %c0_4] : memref<64x128xbf16, #tpu.memory_space<vmem>>, vector<64x128xbf16>
    %cst = arith.constant dense<0.000000e+00> : vector<64x128xf32>
    %9 = tpu.matmul %8, %6, %cst {dimension_numbers = #tpu.dot_dimension_numbers<[1], [0], [0], [1], [0, 0, 1, 1], [], []>} : vector<64x128xbf16>, vector<128x128xbf16>, vector<64x128xf32> -> vector<64x128xf32>
    %10 = arith.addf %7, %9 : vector<64x128xf32>
    %c0_5 = arith.constant 0 : index
    %c0_6 = arith.constant 0 : index
    %11 = vector.load %arg9[%c0_5, %c0_6] : memref<64x128xf32, #tpu.memory_space<vmem>>, vector<64x128xf32>
    tpu.vector_store %arg9[%c0_5, %c0_6], %10 {strides = array<i32>} : memref<64x128xf32, #tpu.memory_space<vmem>>, vector<64x128xf32>,
    %c0_i32_7 = arith.constant 0 : i32
    %12 = arith.cmpi eq, %arg1, %c0_i32_7 : i32
    %13 = arith.extui %12 : i1 to i32
    %c0_i32_8 = arith.constant 0 : i32
    %14 = arith.cmpi ne, %13, %c0_i32_8 : i32
    scf.if %14 {
      %c0_9 = arith.constant 0 : index
      %c0_10 = arith.constant 0 : index
      %15 = vector.load %arg4[%c0_9, %c0_10] : memref<64x128xbf16, #tpu.memory_space<vmem>>, vector<64x128xbf16>
      %c0_11 = arith.constant 0 : index
      %c0_12 = arith.constant 0 : index
      %16 = vector.load %arg5[%c0_11, %c0_12] : memref<128x128xbf16, #tpu.memory_space<vmem>>, vector<128x128xbf16>
      %cst_13 = arith.constant dense<0.000000e+00> : vector<64x128xf32>
      %17 = tpu.matmul %15, %16, %cst_13 {dimension_numbers = #tpu.dot_dimension_numbers<[1], [0], [0], [1], [0, 0, 1, 1], [], []>} : vector<64x128xbf16>, vector<128x128xbf16>, vector<64x128xf32> -> vector<64x128xf32>
      %c0_14 = arith.constant 0 : index
      %c0_15 = arith.constant 0 : index
      %18 = vector.load %arg6[%c0_14, %c0_15] : memref<64x1xf32, #tpu.memory_space<vmem>>, vector<64x1xf32>
      %c0_16 = arith.constant 0 : index
      %c0_17 = arith.constant 0 : index
      %19 = vector.load %arg9[%c0_16, %c0_17] : memref<64x128xf32, #tpu.memory_space<vmem>>, vector<64x128xf32>
      %20 = vector.broadcast %18 : vector<64x1xf32> to vector<64x128xf32>
      %21 = arith.mulf %20, %19 : vector<64x128xf32>
      %22 = arith.addf %21, %17 : vector<64x128xf32>
      %c0_18 = arith.constant 0 : index
      %c0_19 = arith.constant 0 : index
      %23 = vector.load %arg7[%c0_18, %c0_19] : memref<1x128xf32, #tpu.memory_space<vmem>>, vector<1x128xf32>
      %24 = vector.broadcast %23 : vector<1x128xf32> to vector<64x128xf32>
      %25 = arith.addf %22, %24 : vector<64x128xf32>
      %c0_20 = arith.constant 0 : index
      %c0_21 = arith.constant 0 : index
      %26 = vector.load %arg8[%c0_20, %c0_21] : memref<64x128xf32, #tpu.memory_space<vmem>>, vector<64x128xf32>
      tpu.vector_store %arg8[%c0_20, %c0_21], %25 {strides = array<i32>} : memref<64x128xf32, #tpu.memory_space<vmem>>, vector<64x128xf32>,
    } else {
    }
    return
  }
  func.func @transform_0(%arg0: i32, %arg1: i32) -> (i32, i32) {
    %c0_i32 = arith.constant 0 : i32
    return %arg0, %arg1 : i32, i32
  }
  func.func @transform_1(%arg0: i32, %arg1: i32) -> (i32, i32) {
    %c0_i32 = arith.constant 0 : i32
    %c0_i32_0 = arith.constant 0 : i32
    %c0_i32_1 = arith.constant 0 : i32
    return %c0_i32, %c0_i32_0 : i32, i32
  }
  func.func @transform_2(%arg0: i32, %arg1: i32) -> (i32, i32) {
    %c0_i32 = arith.constant 0 : i32
    %c0_i32_0 = arith.constant 0 : i32
    return %arg0, %c0_i32 : i32, i32
  }
  func.func @transform_3(%arg0: i32, %arg1: i32) -> (i32, i32) {
    %c0_i32 = arith.constant 0 : i32
    %c0_i32_0 = arith.constant 0 : i32
    %c0_i32_1 = arith.constant 0 : i32
    return %c0_i32, %c0_i32_0 : i32, i32
  }
  func.func @transform_4(%arg0: i32, %arg1: i32) -> (i32, i32) {
    %c0_i32 = arith.constant 0 : i32
    %c0_i32_0 = arith.constant 0 : i32
    return %arg0, %c0_i32 : i32, i32
  }
  func.func @transform_5(%arg0: i32, %arg1: i32) -> (i32, i32) {
    %c0_i32 = arith.constant 0 : i32
    %c0_i32_0 = arith.constant 0 : i32
    %c0_i32_1 = arith.constant 0 : i32
    return %c0_i32, %c0_i32_0 : i32, i32
  }
  func.func @transform_6(%arg0: i32, %arg1: i32) -> (i32, i32) {
    %c0_i32 = arith.constant 0 : i32
    %c0_i32_0 = arith.constant 0 : i32
    return %arg0, %c0_i32 : i32, i32
  }
}

</mosaic_0001>

<bundles_post_ra>
// kernel: sage_forward_pallas.7
= control target key start
LH: loop header
LB: loop body
LE: loop exit
PB: predicated region body
PF: predicated region fallthrough
CT: control target
= control target key end

     0   :  { %s1180_s21 = smov 0   ;;  %s1182_s22 = smov 0   ;;  %s1301_s0 = inlined_call_operand.vmem [shape: bf16[128,128], index: 0, kind: input, shape index: {}]   ;;  %s1302_s1 = inlined_call_operand.vmem [shape: bf16[128,128], index: 1, kind: input, shape index: {}]   ;;  %s1303_s2 = inlined_call_operand.vmem [shape: bf16[128,128], index: 2, kind: input, shape index: {}]   ;;  %s1304_s3 = inlined_call_operand.vmem [shape: bf16[128,128], index: 3, kind: input, shape index: {}]   ;;  %s1305_s4 = inlined_call_operand.vmem [shape: f32[128,1], index: 4, kind: input, shape index: {}]   ;;  %s1306_s5 = inlined_call_operand.vmem [shape: f32[1,128], index: 5, kind: input, shape index: {}]   ;;  %s1307_s6 = inlined_call_operand.vmem [shape: bf16[128,128], index: 6, kind: output, shape index: {}]  }
   0x1   :  { %s1184_s23 = smov 0  }
   0x2 LB: > { %s28_s24 = sadd.s32 1, %s1138_s22  ;;  %p922_p0 = scmp.ge.s32.totalorder %s1142_s23, 1  ;;  %s1142_s23 = sphi %s1184_s23, %s16_s23   ;;  %s1138_s22 = sphi %s1182_s22, %s1309_s22   ;;  %s1134_s21 = sphi %s1180_s21, %s1308_s21  }
   0x3   : > { %p30_p1 = scmp.ge.s32.totalorder %s28_s24, 2  ;;  %p252_p2 = scmp.lt.s32.totalorder %s1142_s23, 3 }
   0x5   : > { %s1311_s24 = smov (%p30_p1, %s28_s24), 0  ;;  %p253_p3 = pnand %p922_p0, %p252_p2 }
   0x6   : > { %v1096_v0 = vld [vmem:[%s1302_s1] sm:$0xff] (!%p253_p3)   ;;  %s923_s27 = sshll.u32 (!%p253_p3), %s1134_s21, 3  ;;  %v1098_v2 = vld [vmem:[%s1302_s1 + $0x8] sm:$0xff] (!%p253_p3)   ;;  %v1100_v4 = vld [vmem:[%s1302_s1 + $0x10] sm:$0xff] (!%p253_p3)   ;;  %v1144_v6 = vmov (!%p253_p3), 0  }
   0x7   : > { %256 = sbr.rel (%p253_p3) target bundleno = 273 (0x111), region = 44  ;;  %v1097_v1 = vld [vmem:[%s1304_s3] sm:$0xff] (!%p253_p3)   ;;  %p296_p4 = scmp.lt.s32.totalorder (!%p253_p3), %s923_s27, 15  ;;  %1021 = vmatprep.subr.bf16.mxu0 (!%p253_p3), %v1096_v0  ;;  %v1099_v3 = vld [vmem:[%s1304_s3 + $0x8] sm:$0xff] (!%p253_p3)   ;;  %v1101_v5 = vld [vmem:[%s1304_s3 + $0x10] sm:$0xff] (!%p253_p3)   ;;  %1095 = vset.pattern.permute.xlu1 (!%p253_p3), %v1144_v6 }
   0x8   : > { %1045 = vmatprep.subr.bf16.mxu1 (!%p253_p3), %v1097_v1  ;;  %1022 = vmatpush3.bf16.msra.mxu0 (!%p253_p3), %v1096_v0  ;;  %v1102_v7 = vld [vmem:[%s1302_s1 + $0x18] sm:$0xff] (!%p253_p3)   ;;  %v1104_v9 = vld [vmem:[%s1302_s1 + $0x20] sm:$0xff] (!%p253_p3)   ;;  %v1106_v11 = vld [vmem:[%s1302_s1 + $0x28] sm:$0xff] (!%p253_p3)  }
   0x9   : > { %1046 = vmatpush3.bf16.msra.mxu1 (!%p253_p3), %v1097_v1  ;;  %1023 = vmatprep.subr.bf16.mxu0 (!%p253_p3), %v1098_v2  ;;  %v1103_v8 = vld [vmem:[%s1304_s3 + $0x18] sm:$0xff] (!%p253_p3)   ;;  %v1105_v10 = vld [vmem:[%s1304_s3 + $0x20] sm:$0xff] (!%p253_p3)   ;;  %v1107_v12 = vld [vmem:[%s1304_s3 + $0x28] sm:$0xff] (!%p253_p3)  }
   0xa   : > { %1047 = vmatprep.subr.bf16.mxu1 (!%p253_p3), %v1099_v3  ;;  %1094 = vset.pattern.permute.xlu0 (!%p253_p3), %v1144_v6  ;;  %v1108_v15 = vld [vmem:[%s1302_s1 + $0x30] sm:$0xff] (!%p253_p3)   ;;  %v1110_v17 = vld [vmem:[%s1302_s1 + $0x38] sm:$0xff] (!%p253_p3)   ;;  %v955_v43 = vld [vmem:[%s1306_s5] ss:$0 sm:$0xff] (!%p253_p3) }
   0xb   : > { %v1109_v16 = vld [vmem:[%s1304_s3 + $0x30] sm:$0xff] (!%p253_p3)   ;;  %v1111_v20 = vld [vmem:[%s1304_s3 + $0x38] sm:$0xff] (!%p253_p3)  }
   0xc   : > { %1024 = vmatpush3.bf16.msra.mxu0 (!%p253_p3), %v1098_v2 }
   0xd   : > { %1048 = vmatpush3.bf16.msra.mxu1 (!%p253_p3), %v1099_v3  ;;  %1025 = vmatprep.subr.bf16.mxu0 (!%p253_p3), %v1100_v4 }
   0xe   : > { %s1313_s27 = smov (!%p296_p4, %s923_s27), 15  ;;  %1049 = vmatprep.subr.bf16.mxu1 %v1101_v5 }
   0xf   : > { %s1225_s18 = sshll.u32 %s1313_s27, 2  ;;  %s928_s13 = sshll.u32 %s1313_s27, 3 }
  0x10   : > { %1026 = vmatpush3.bf16.msra.mxu0 %v1100_v4  ;;  %s1237_s29 = scalar_lea.vmem %s1301_s0, %s1225_s18  ;;  %s1246_s10 = scalar_lea.vmem %s1303_s2, %s1225_s18 }
  0x11   : > { %1050 = vmatpush3.bf16.msra.mxu1 %v1101_v5  ;;  %1027 = vmatprep.subr.bf16.mxu0 %v1102_v7  ;;  %v1112_v13 = vld [vmem:[%s1237_s29] sm:$0xff]   ;;  %s1263_s21 = scalar_lea.vmem %s1305_s4, %s928_s13  ;;  %v1114_v23 = vld [vmem:[%s1237_s29 + $0x8] sm:$0xff]   ;;  %v1116_v26 = vld [vmem:[%s1237_s29 + $0x10] sm:$0xff]   ;;  %s320_s9 = scalar_lea.vmem %s1307_s6, %s1225_s18 }
  0x12   : > { %1051 = vmatprep.subr.bf16.mxu1 %v1103_v8  ;;  %v1113_v14 = vld [vmem:[%s1246_s10] sm:$0xff]   ;;  %1037 = vmatprep.mubr.bf16.mxu0 %v1112_v13  ;;  %v691_v18 = vld [vmem:[%s1263_s21 + $0x10] sm:$0xff]  ;;  %v692_v21 = vld [vmem:[%s1263_s21 + $0x18] sm:$0xff] }
  0x13   : > { %1061 = vmatprep.mubr.bf16.mxu1 %v1113_v14  ;;  %v689_v19 = vld [vmem:[%s1263_s21] sm:$0xff]  ;;  %717 = vperm.xlu1 %1095, %v691_v18   ;;  %v690_v22 = vld [vmem:[%s1263_s21 + $0x8] sm:$0xff]  ;;  %v1117_v28 = vld [vmem:[%s1246_s10 + $0x10] sm:$0xff]  }
  0x14   : > { %1028 = vmatpush3.bf16.msra.mxu0 %v1102_v7  ;;  %707 = vperm.xlu0 %1094, %v689_v19   ;;  %v694_v24 = vld [vmem:[%s1263_s21 + $0x28] sm:$0xff]  ;;  %v693_v27 = vld [vmem:[%s1263_s21 + $0x20] sm:$0xff]  ;;  %v696_v29 = vld [vmem:[%s1263_s21 + $0x38] sm:$0xff] }
  0x15   : > { %1052 = vmatpush3.bf16.msra.mxu1 %v1103_v8  ;;  %1029 = vmatprep.subr.bf16.mxu0 %v1104_v9  ;;  %v1115_v25 = vld [vmem:[%s1246_s10 + $0x8] sm:$0xff]   ;;  %v695_v30 = vld [vmem:[%s1263_s21 + $0x30] sm:$0xff]  ;;  %v1118_v31 = vld [vmem:[%s1237_s29 + $0x18] sm:$0xff]  }
  0x16   : > { %1053 = vmatprep.subr.bf16.mxu1 %v1105_v10  ;;  %v1119_v32 = vld [vmem:[%s1246_s10 + $0x18] sm:$0xff]  }
  0x17   : > { %722 = vperm.xlu1 %1095, %v692_v21  }
  0x18   : > { %1030 = vmatpush3.bf16.msra.mxu0 %v1104_v9  ;;  %712 = vperm.xlu0 %1094, %v690_v22  }
  0x19   : > { %1054 = vmatpush3.bf16.msra.mxu1 %v1105_v10  ;;  %1031 = vmatprep.subr.bf16.mxu0 %v1106_v11 }
  0x1a   : > { %1055 = vmatprep.subr.bf16.mxu1 %v1107_v12 }
  0x1b   : > { %732 = vperm.xlu1 %1095, %v694_v24  }
  0x1c   : > { %1032 = vmatpush3.bf16.msra.mxu0 %v1106_v11  ;;  %727 = vperm.xlu0 %1094, %v693_v27  }
  0x1d   : > { %1056 = vmatpush3.bf16.msra.mxu1 %v1107_v12  ;;  %1033 = vmatprep.subr.bf16.mxu0 %v1108_v15 }
  0x1e   : > { %1057 = vmatprep.subr.bf16.mxu1 %v1109_v16 }
  0x1f   : > { %742 = vperm.xlu1 %1095, %v696_v29  }
  0x20   : > { %1034 = vmatpush3.bf16.msra.mxu0 %v1108_v15  ;;  %737 = vperm.xlu0 %1094, %v695_v30  }
  0x21   : > { %1058 = vmatpush3.bf16.msra.mxu1 %v1109_v16  ;;  %1035 = vmatprep.subr.bf16.mxu0 %v1110_v17 }
  0x22   : > { %1059 = vmatprep.subr.bf16.mxu1 %v1111_v20 }
  0x24   : > { %1036 = vmatpush3.bf16.msra.mxu0 %v1110_v17 }
  0x25   : > { %1060 = vmatpush3.bf16.msra.mxu1 %v1111_v20 }
  0x27   : > { %1038 = vmatmul.mubr.bf16.vlgmr.msra.gmra.mrb[0].mxu0 %v1114_v23 }
  0x28   : > { %1062 = vmatmul.mubr.bf16.vlgmr.msra.gmra.mrb[0].mxu1 %v1115_v25  ;;  %1041 = vmatprep.mubr.bf16.mxu0 %v1116_v26 }
  0x29   : > { %1065 = vmatprep.mubr.bf16.mxu1 %v1117_v28 }
  0x2f   : > { %1042 = vmatmul.mubr.bf16.gmra.mrb[4].mxu0 %v1118_v31 }
  0x30   : > { %1066 = vmatmul.mubr.bf16.gmra.mrb[4].mxu1 %v1119_v32 }
  0x92   : > { %v718_v33 = vpop.permute.xlu1 %717 }
  0x93   : > { %v708_v34 = vpop.permute.xlu0 %707 }
  0x96   : > { %v723_v35 = vpop.permute.xlu1 %722 }
  0x97   : > { %v713_v36 = vpop.permute.xlu0 %712 }
  0x9a   : > { %v733_v37 = vpop.permute.xlu1 %732 }
  0x9b   : > { %v728_v38 = vpop.permute.xlu0 %727 }
  0x9e   : > { %v743_v58 = vpop.permute.xlu1 %742 }
  0x9f   : > { %v738_v60 = vpop.permute.xlu0 %737 }
  0xfa   : > { %v1039_v39 = vpop.f32.mrb[0].mxu0 }
  0xfb   : > { %v747_v40 = vmul.f32 %v1039_v39, %v718_v33  ;;  %v1063_v41 = vpop.f32.mrb[0].mxu1  ;;  %v478_v42 = vpop.f32.mrb[1].mxu0 }
  0xfc   : > { %v745_v44 = vmul.f32 %v708_v34, %v478_v42  ;;  %v658_v45 = vpop.f32.mrb[1].mxu1  ;;  %v1040_v46 = vpop.f32.mrb[2].mxu0 }
  0xfd   : > { %v755_v47 = vadd.f32 %v1063_v41, %v747_v40  ;;  %v748_v48 = vmul.f32 %v1040_v46, %v723_v35  ;;  %v1064_v49 = vpop.f32.mrb[2].mxu1  ;;  %v481_v50 = vpop.f32.mrb[3].mxu0 }
  0xfe   : > { %v753_v51 = vadd.f32 %v745_v44, %v658_v45  ;;  %v746_v52 = vmul.f32 %v713_v36, %v481_v50  ;;  %v661_v53 = vpop.f32.mrb[3].mxu1 }
  0xff   : > { %v770_v54 = vadd.f32 %v955_v43, %v755_v47  ;;  %v756_v55 = vadd.f32 %v1064_v49, %v748_v48 }
 0x100   : > { %v768_v56 = vadd.f32 %v955_v43, %v753_v51  ;;  %v754_v57 = vadd.f32 %v746_v52, %v661_v53 }
 0x101   : > { %v771_v59 = vadd.f32 %v955_v43, %v756_v55  ;;  %v778_v63 = vmax.f32 %v770_v54, 0.0 }
 0x102   : > { %v769_v61 = vadd.f32 %v955_v43, %v754_v57  ;;  %v1043_v62 = vpop.f32.mrb[4].mxu0  ;;  %v776_v4 = vmax.f32 %v768_v56, 0.0 }
 0x103   : > { %v779_v0 = vmax.f32 %v771_v59, 0.0  ;;  %v751_v1 = vmul.f32 %v1043_v62, %v738_v60  ;;  %v1067_v2 = vpop.f32.mrb[4].mxu1  ;;  %v494_v3 = vpop.f32.mrb[5].mxu0 }
 0x104   : > { %v777_v5 = vmax.f32 %v769_v61, 0.0  ;;  %v749_v6 = vmul.f32 %v728_v38, %v494_v3  ;;  %v674_v7 = vpop.f32.mrb[5].mxu1  ;;  %v1044_v8 = vpop.f32.mrb[6].mxu0 }
 0x105   : > { %v982_v9 = vpack.c.bf16 %v779_v0, %v778_v63  ;;  %v759_v10 = vadd.f32 %v1067_v2, %v751_v1  ;;  %v752_v11 = vmul.f32 %v1044_v8, %v743_v58  ;;  %v1068_v12 = vpop.f32.mrb[6].mxu1  ;;  %v497_v13 = vpop.f32.mrb[7].mxu0 }
 0x106   : > { %v977_v14 = vpack.c.bf16 %v777_v5, %v776_v4  ;;  %v757_v15 = vadd.f32 %v749_v6, %v674_v7  ;;  %v750_v16 = vmul.f32 %v733_v37, %v497_v13  ;;  %v677_v17 = vpop.f32.mrb[7].mxu1 }
 0x107   : > { %994 = vst [vmem:[%s320_s9 + $0x8] sm:$0xff] %v982_v9   ;;  %v774_v18 = vadd.f32 %v955_v43, %v759_v10  ;;  %v760_v19 = vadd.f32 %v1068_v12, %v752_v11 }
 0x108   : > { %978 = vst [vmem:[%s320_s9] sm:$0xff] %v977_v14   ;;  %v772_v20 = vadd.f32 %v955_v43, %v757_v15  ;;  %v758_v21 = vadd.f32 %v750_v16, %v677_v17 }
 0x109   : > { %v775_v22 = vadd.f32 %v955_v43, %v760_v19  ;;  %v782_v24 = vmax.f32 %v774_v18, 0.0 }
 0x10a   : > { %v773_v23 = vadd.f32 %v955_v43, %v758_v21  ;;  %v780_v26 = vmax.f32 %v772_v20, 0.0 }
 0x10b   : > { %v783_v25 = vmax.f32 %v775_v22, 0.0 }
 0x10c   : > { %v781_v27 = vmax.f32 %v773_v23, 0.0 }
 0x10d   : > { %v992_v28 = vpack.c.bf16 %v783_v25, %v782_v24 }
 0x10e   : > { %v987_v29 = vpack.c.bf16 %v781_v27, %v780_v26 }
 0x10f   : > { %996 = vst [vmem:[%s320_s9 + $0x18] sm:$0xff] %v992_v28  }
 0x110   : > { %995 = vst [vmem:[%s320_s9 + $0x10] sm:$0xff] %v987_v29  }
 0x111 PF: > { %s16_s23 = sadd.s32 1, %s1142_s23   ;;  %s1308_s21 = smov %s1138_s22 }
 0x112   : > { %p13_p5 = scmp.ge.s32.totalorder %s16_s23, 4   ;;  %s1309_s22 = smov %s1311_s24 }
 0x114   :  { %15 = sbr.rel (!%p13_p5) target bundleno = 2 (0x2), region = 89 }

// kernel: sage_forward_pallas.6
= control target key start
LH: loop header
LB: loop body
LE: loop exit
PB: predicated region body
PF: predicated region fallthrough
CT: control target
= control target key end

     0   :  { %7 = vsyncpa [#allocation4], 0  ;;  %s739_s0 = inlined_call_operand.hbm [shape: bf16[128,128], index: 0, kind: input, shape index: {}]   ;;  %s740_s1 = inlined_call_operand.hbm [shape: bf16[128,128], index: 1, kind: input, shape index: {}]   ;;  %s741_s2 = inlined_call_operand.vmem [shape: bf16[128,128], index: 2, kind: output, shape index: {}]  }
   0x1   :  { %8 = vsyncpa [#allocation6], 0  ;;  %s672_s9 = smov [#allocation3]   ;;  %s624_s13 = scalar_lea.hbm %s739_s0, 1024 }
   0x2   :  { %s14_s10 = sshll.u32 %s672_s9, 4  ;;  %p625_p0 = scmp.ne.s32.totalorder %s739_s0, %s624_s13  ;;  %s15_s10 = int_to_ptr.vmem [resolvable:$true] %s14_s10 }
   0x3   :  { %p628_p1 = scmp.lt.u32.totalorder %s624_s13, %s739_s0 }
   0x5   :  { %p630_p2 = pnand %p628_p1, %p625_p0 }
   0x7   :  { %633 = shalt.err (!%p630_p2)
}
   0x8   :  { %s634_s18 = scalar_lea.vmem %s15_s10, 1024  ;;  %p639_p4 = scmp.lt.s32.totalorder %s15_s10, %s15_s10 }
   0x9   :  { %p635_p3 = scmp.ne.s32.totalorder %s15_s10, %s634_s18  ;;  %p640_p5 = scmp.lt.s32.totalorder %s634_s18, %s634_s18 }
   0xb   :  { %p641_p6 = por %p640_p5, %p639_p4 }
   0xd   :  { %p642_p7 = pnand %p641_p6, %p635_p3 }
   0xf   :  { %645 = shalt.err (!%p642_p7)
}
  0x10   :  { %s673_s19 = smov 64   ;;  %s674_s20 = smov 4  }
  0x11   :  { %20 = dma.hbm_to_vmem [thread:$0]  %s739_s0, 1024, %s15_s10, [#allocation4], %s673_s19, %s673_s19, %s674_s20  }
  0x12   :  { %s675_s23 = smov [#allocation5]   ;;  %s646_s27 = scalar_lea.hbm %s740_s1, 1024 }
  0x13   :  { %s26_s24 = sshll.u32 %s675_s23, 4  ;;  %p647_p8 = scmp.ne.s32.totalorder %s740_s1, %s646_s27  ;;  %s27_s24 = int_to_ptr.vmem [resolvable:$true] %s26_s24 }
  0x14   :  { %p650_p9 = scmp.lt.u32.totalorder %s646_s27, %s740_s1 }
  0x16   :  { %p652_p10 = pnand %p650_p9, %p647_p8 }
  0x18   :  { %655 = shalt.err (!%p652_p10)
}
  0x19   :  { %s656_s4 = scalar_lea.vmem %s27_s24, 1024  ;;  %p661_p12 = scmp.lt.s32.totalorder %s27_s24, %s27_s24 }
  0x1a   :  { %p657_p11 = scmp.ne.s32.totalorder %s27_s24, %s656_s4  ;;  %p662_p13 = scmp.lt.s32.totalorder %s656_s4, %s656_s4 }
  0x1c   :  { %p663_p0 = por %p662_p13, %p661_p12 }
  0x1e   :  { %p664_p1 = pnand %p663_p0, %p657_p11 }
  0x20   :  { %667 = shalt.err (!%p664_p1)
}
  0x21   :  { %32 = dma.hbm_to_vmem [thread:$0]  %s740_s1, 1024, %s27_s24, [#allocation6], %s673_s19, %s673_s19, %s674_s20  }
  0x22   :  { %668 = dma.done.wait [#allocation4], 1024  }
  0x23   :  { %669 = vsyncadd [#allocation4], 4294966272 }
  0x24   :  { %670 = dma.done.wait [#allocation6], 1024  }
  0x25   :  { %671 = vsyncadd [#allocation6], 4294966272  ;;  %v608_v0 = vld [vmem:[#allocation5] sm:$0xff]   ;;  %v609_v1 = vld [vmem:[#allocation5 + $0x8] sm:$0xff]  }
  0x26   :  { %556 = vmatprep.subr.bf16.mxu0 %v608_v0  ;;  %588 = vmatprep.subr.bf16.mxu1 %v608_v0  ;;  %v610_v2 = vld [vmem:[#allocation5 + $0x10] sm:$0xff]   ;;  %v611_v3 = vld [vmem:[#allocation5 + $0x18] sm:$0xff]   ;;  %v616_v4 = vld [vmem:[#allocation3] sm:$0xff]  }
  0x27   :  { %557 = vmatpush3.bf16.msra.mxu0 %v608_v0  ;;  %596 = vmatpush3.bf16.msra.mxu1 %v608_v0  ;;  %v617_v5 = vld [vmem:[#allocation3 + $0x20] sm:$0xff]   ;;  %v613_v7 = vld [vmem:[#allocation5 + $0x28] sm:$0xff]   ;;  %v614_v8 = vld [vmem:[#allocation5 + $0x30] sm:$0xff]  }
  0x28   :  { %558 = vmatprep.subr.bf16.mxu0 %v609_v1  ;;  %589 = vmatprep.subr.bf16.mxu1 %v609_v1  ;;  %v612_v6 = vld [vmem:[#allocation5 + $0x20] sm:$0xff]   ;;  %v615_v9 = vld [vmem:[#allocation5 + $0x38] sm:$0xff]   ;;  %v618_v10 = vld [vmem:[#allocation3 + $0x8] sm:$0xff]  }
  0x29   :  { %572 = vmatprep.mubr.bf16.mxu0 %v616_v4  ;;  %580 = vmatprep.mubr.bf16.mxu1 %v617_v5  ;;  %v619_v11 = vld [vmem:[#allocation3 + $0x28] sm:$0xff]   ;;  %v620_v12 = vld [vmem:[#allocation3 + $0x10] sm:$0xff]   ;;  %v622_v14 = vld [vmem:[#allocation3 + $0x18] sm:$0xff]  }
  0x2a   :  { %v621_v13 = vld [vmem:[#allocation3 + $0x30] sm:$0xff]   ;;  %v623_v15 = vld [vmem:[#allocation3 + $0x38] sm:$0xff]  }
  0x2b   :  { %559 = vmatpush3.bf16.msra.mxu0 %v609_v1  ;;  %597 = vmatpush3.bf16.msra.mxu1 %v609_v1 }
  0x2c   :  { %560 = vmatprep.subr.bf16.mxu0 %v610_v2  ;;  %590 = vmatprep.subr.bf16.mxu1 %v610_v2 }
  0x2f   :  { %561 = vmatpush3.bf16.msra.mxu0 %v610_v2  ;;  %598 = vmatpush3.bf16.msra.mxu1 %v610_v2 }
  0x30   :  { %562 = vmatprep.subr.bf16.mxu0 %v611_v3  ;;  %591 = vmatprep.subr.bf16.mxu1 %v611_v3 }
  0x33   :  { %563 = vmatpush3.bf16.msra.mxu0 %v611_v3  ;;  %599 = vmatpush3.bf16.msra.mxu1 %v611_v3 }
  0x34   :  { %564 = vmatprep.subr.bf16.mxu0 %v612_v6  ;;  %592 = vmatprep.subr.bf16.mxu1 %v612_v6 }
  0x37   :  { %565 = vmatpush3.bf16.msra.mxu0 %v612_v6  ;;  %600 = vmatpush3.bf16.msra.mxu1 %v612_v6 }
  0x38   :  { %566 = vmatprep.subr.bf16.mxu0 %v613_v7  ;;  %593 = vmatprep.subr.bf16.mxu1 %v613_v7 }
  0x3b   :  { %567 = vmatpush3.bf16.msra.mxu0 %v613_v7  ;;  %601 = vmatpush3.bf16.msra.mxu1 %v613_v7 }
  0x3c   :  { %568 = vmatprep.subr.bf16.mxu0 %v614_v8  ;;  %594 = vmatprep.subr.bf16.mxu1 %v614_v8 }
  0x3f   :  { %569 = vmatpush3.bf16.msra.mxu0 %v614_v8  ;;  %602 = vmatpush3.bf16.msra.mxu1 %v614_v8 }
  0x40   :  { %570 = vmatprep.subr.bf16.mxu0 %v615_v9  ;;  %595 = vmatprep.subr.bf16.mxu1 %v615_v9 }
  0x43   :  { %571 = vmatpush3.bf16.msra.mxu0 %v615_v9  ;;  %603 = vmatpush3.bf16.msra.mxu1 %v615_v9 }
  0x46   :  { %573 = vmatmul.mubr.bf16.vlgmr.msra.gmra.mrb[0].mxu0 %v618_v10  ;;  %581 = vmatmul.mubr.bf16.vlgmr.msra.gmra.mrb[0].mxu1 %v619_v11 }
  0x47   :  { %576 = vmatprep.mubr.bf16.mxu0 %v620_v12  ;;  %584 = vmatprep.mubr.bf16.mxu1 %v621_v13 }
  0x4e   :  { %577 = vmatmul.mubr.bf16.gmra.mrb[4].mxu0 %v622_v14  ;;  %585 = vmatmul.mubr.bf16.gmra.mrb[4].mxu1 %v623_v15 }
 0x119   :  { %v574_v16 = vpop.f32.mrb[0].mxu0  ;;  %v582_v17 = vpop.f32.mrb[0].mxu1 }
 0x11a   :  { %v243_v18 = vpop.f32.mrb[1].mxu0  ;;  %v275_v19 = vpop.f32.mrb[1].mxu1 }
 0x11b   :  { %v575_v20 = vpop.f32.mrb[2].mxu0  ;;  %v583_v21 = vpop.f32.mrb[2].mxu1 }
 0x11c   :  { %v501_v22 = vpack.c.bf16 %v575_v20, %v574_v16  ;;  %v521_v23 = vpack.c.bf16 %v583_v21, %v582_v17  ;;  %v246_v24 = vpop.f32.mrb[3].mxu0  ;;  %v278_v25 = vpop.f32.mrb[3].mxu1 }
 0x11d   :  { %v496_v26 = vpack.c.bf16 %v246_v24, %v243_v18  ;;  %v516_v27 = vpack.c.bf16 %v278_v25, %v275_v19 }
 0x11e   :  { %533 = vst [vmem:[%s741_s2 + $0x8] sm:$0xff] %v501_v22   ;;  %537 = vst [vmem:[%s741_s2 + $0x28] sm:$0xff] %v521_v23  }
 0x11f   :  { %497 = vst [vmem:[%s741_s2] sm:$0xff] %v496_v26   ;;  %536 = vst [vmem:[%s741_s2 + $0x20] sm:$0xff] %v516_v27  }
 0x121   :  { %v578_v28 = vpop.f32.mrb[4].mxu0  ;;  %v586_v29 = vpop.f32.mrb[4].mxu1 }
 0x122   :  { %v259_v30 = vpop.f32.mrb[5].mxu0  ;;  %v291_v31 = vpop.f32.mrb[5].mxu1 }
 0x123   :  { %v579_v32 = vpop.f32.mrb[6].mxu0  ;;  %v587_v33 = vpop.f32.mrb[6].mxu1 }
 0x124   :  { %v511_v34 = vpack.c.bf16 %v579_v32, %v578_v28  ;;  %v531_v35 = vpack.c.bf16 %v587_v33, %v586_v29  ;;  %v262_v36 = vpop.f32.mrb[7].mxu0  ;;  %v294_v37 = vpop.f32.mrb[7].mxu1 }
 0x125   :  { %v506_v38 = vpack.c.bf16 %v262_v36, %v259_v30  ;;  %v526_v39 = vpack.c.bf16 %v294_v37, %v291_v31 }
 0x126   :  { %535 = vst [vmem:[%s741_s2 + $0x18] sm:$0xff] %v511_v34   ;;  %539 = vst [vmem:[%s741_s2 + $0x38] sm:$0xff] %v531_v35  }
 0x127   :  { %534 = vst [vmem:[%s741_s2 + $0x10] sm:$0xff] %v506_v38   ;;  %538 = vst [vmem:[%s741_s2 + $0x30] sm:$0xff] %v526_v39  }
 0x128   :  { %441 = vsyncpa [#allocation4], 1 }
 0x129   :  { %442 = vsyncpa [#allocation6], 1 }

// kernel: sage_forward_pallas.8
= control target key start
LH: loop header
LB: loop body
LE: loop exit
PB: predicated region body
PF: predicated region fallthrough
CT: control target
= control target key end

     0   :  { %s677_s1 = inlined_call_operand.vmem [shape: bf16[128,128], index: 1, kind: input, shape index: {}]   ;;  %s678_s0 = inlined_call_operand.vmem [shape: bf16[128,128], index: 0, kind: input, shape index: {}]   ;;  %s679_s2 = inlined_call_operand.vmem [shape: bf16[128,128], index: 2, kind: output, shape index: {}]  }
   0x1   :  { %v574_v0 = vld [vmem:[%s677_s1] sm:$0xff]   ;;  %v575_v1 = vld [vmem:[%s677_s1 + $0x8] sm:$0xff]   ;;  %v576_v2 = vld [vmem:[%s677_s1 + $0x10] sm:$0xff]  }
   0x2   :  { %526 = vmatprep.subr.bf16.mxu0 %v574_v0  ;;  %558 = vmatprep.subr.bf16.mxu1 %v574_v0  ;;  %v577_v3 = vld [vmem:[%s677_s1 + $0x18] sm:$0xff]   ;;  %v582_v4 = vld [vmem:[%s678_s0] sm:$0xff]   ;;  %v579_v7 = vld [vmem:[%s677_s1 + $0x28] sm:$0xff]  }
   0x3   :  { %527 = vmatpush3.bf16.msra.mxu0 %v574_v0  ;;  %566 = vmatpush3.bf16.msra.mxu1 %v574_v0  ;;  %v583_v5 = vld [vmem:[%s678_s0 + $0x20] sm:$0xff]   ;;  %v580_v8 = vld [vmem:[%s677_s1 + $0x30] sm:$0xff]   ;;  %v581_v9 = vld [vmem:[%s677_s1 + $0x38] sm:$0xff]  }
   0x4   :  { %528 = vmatprep.subr.bf16.mxu0 %v575_v1  ;;  %559 = vmatprep.subr.bf16.mxu1 %v575_v1  ;;  %v578_v6 = vld [vmem:[%s677_s1 + $0x20] sm:$0xff]   ;;  %v584_v10 = vld [vmem:[%s678_s0 + $0x8] sm:$0xff]   ;;  %v586_v12 = vld [vmem:[%s678_s0 + $0x10] sm:$0xff]  }
   0x5   :  { %542 = vmatprep.mubr.bf16.mxu0 %v582_v4  ;;  %550 = vmatprep.mubr.bf16.mxu1 %v583_v5  ;;  %v585_v11 = vld [vmem:[%s678_s0 + $0x28] sm:$0xff]   ;;  %v587_v13 = vld [vmem:[%s678_s0 + $0x30] sm:$0xff]   ;;  %v588_v14 = vld [vmem:[%s678_s0 + $0x18] sm:$0xff]  }
   0x6   :  { %v589_v15 = vld [vmem:[%s678_s0 + $0x38] sm:$0xff]  }
   0x7   :  { %529 = vmatpush3.bf16.msra.mxu0 %v575_v1  ;;  %567 = vmatpush3.bf16.msra.mxu1 %v575_v1 }
   0x8   :  { %530 = vmatprep.subr.bf16.mxu0 %v576_v2  ;;  %560 = vmatprep.subr.bf16.mxu1 %v576_v2 }
   0xb   :  { %531 = vmatpush3.bf16.msra.mxu0 %v576_v2  ;;  %568 = vmatpush3.bf16.msra.mxu1 %v576_v2 }
   0xc   :  { %532 = vmatprep.subr.bf16.mxu0 %v577_v3  ;;  %561 = vmatprep.subr.bf16.mxu1 %v577_v3 }
   0xf   :  { %533 = vmatpush3.bf16.msra.mxu0 %v577_v3  ;;  %569 = vmatpush3.bf16.msra.mxu1 %v577_v3 }
  0x10   :  { %534 = vmatprep.subr.bf16.mxu0 %v578_v6  ;;  %562 = vmatprep.subr.bf16.mxu1 %v578_v6 }
  0x13   :  { %535 = vmatpush3.bf16.msra.mxu0 %v578_v6  ;;  %570 = vmatpush3.bf16.msra.mxu1 %v578_v6 }
  0x14   :  { %536 = vmatprep.subr.bf16.mxu0 %v579_v7  ;;  %563 = vmatprep.subr.bf16.mxu1 %v579_v7 }
  0x17   :  { %537 = vmatpush3.bf16.msra.mxu0 %v579_v7  ;;  %571 = vmatpush3.bf16.msra.mxu1 %v579_v7 }
  0x18   :  { %538 = vmatprep.subr.bf16.mxu0 %v580_v8  ;;  %564 = vmatprep.subr.bf16.mxu1 %v580_v8 }
  0x1b   :  { %539 = vmatpush3.bf16.msra.mxu0 %v580_v8  ;;  %572 = vmatpush3.bf16.msra.mxu1 %v580_v8 }
  0x1c   :  { %540 = vmatprep.subr.bf16.mxu0 %v581_v9  ;;  %565 = vmatprep.subr.bf16.mxu1 %v581_v9 }
  0x1f   :  { %541 = vmatpush3.bf16.msra.mxu0 %v581_v9  ;;  %573 = vmatpush3.bf16.msra.mxu1 %v581_v9 }
  0x22   :  { %543 = vmatmul.mubr.bf16.vlgmr.msra.gmra.mrb[0].mxu0 %v584_v10  ;;  %551 = vmatmul.mubr.bf16.vlgmr.msra.gmra.mrb[0].mxu1 %v585_v11 }
  0x23   :  { %546 = vmatprep.mubr.bf16.mxu0 %v586_v12  ;;  %554 = vmatprep.mubr.bf16.mxu1 %v587_v13 }
  0x2a   :  { %547 = vmatmul.mubr.bf16.gmra.mrb[4].mxu0 %v588_v14  ;;  %555 = vmatmul.mubr.bf16.gmra.mrb[4].mxu1 %v589_v15 }
  0xf5   :  { %v544_v16 = vpop.f32.mrb[0].mxu0  ;;  %v552_v17 = vpop.f32.mrb[0].mxu1 }
  0xf6   :  { %v215_v18 = vpop.f32.mrb[1].mxu0  ;;  %v247_v19 = vpop.f32.mrb[1].mxu1 }
  0xf7   :  { %v545_v20 = vpop.f32.mrb[2].mxu0  ;;  %v553_v21 = vpop.f32.mrb[2].mxu1 }
  0xf8   :  { %v471_v22 = vpack.c.bf16 %v545_v20, %v544_v16  ;;  %v491_v23 = vpack.c.bf16 %v553_v21, %v552_v17  ;;  %v218_v24 = vpop.f32.mrb[3].mxu0  ;;  %v250_v25 = vpop.f32.mrb[3].mxu1 }
  0xf9   :  { %v466_v26 = vpack.c.bf16 %v218_v24, %v215_v18  ;;  %v486_v27 = vpack.c.bf16 %v250_v25, %v247_v19 }
  0xfa   :  { %503 = vst [vmem:[%s679_s2 + $0x8] sm:$0xff] %v471_v22   ;;  %507 = vst [vmem:[%s679_s2 + $0x28] sm:$0xff] %v491_v23  }
  0xfb   :  { %467 = vst [vmem:[%s679_s2] sm:$0xff] %v466_v26   ;;  %506 = vst [vmem:[%s679_s2 + $0x20] sm:$0xff] %v486_v27  }
  0xfd   :  { %v548_v28 = vpop.f32.mrb[4].mxu0  ;;  %v556_v29 = vpop.f32.mrb[4].mxu1 }
  0xfe   :  { %v231_v30 = vpop.f32.mrb[5].mxu0  ;;  %v263_v31 = vpop.f32.mrb[5].mxu1 }
  0xff   :  { %v549_v32 = vpop.f32.mrb[6].mxu0  ;;  %v557_v33 = vpop.f32.mrb[6].mxu1 }
 0x100   :  { %v481_v34 = vpack.c.bf16 %v549_v32, %v548_v28  ;;  %v501_v35 = vpack.c.bf16 %v557_v33, %v556_v29  ;;  %v234_v36 = vpop.f32.mrb[7].mxu0  ;;  %v266_v37 = vpop.f32.mrb[7].mxu1 }
 0x101   :  { %v476_v38 = vpack.c.bf16 %v234_v36, %v231_v30  ;;  %v496_v39 = vpack.c.bf16 %v266_v37, %v263_v31 }
 0x102   :  { %505 = vst [vmem:[%s679_s2 + $0x18] sm:$0xff] %v481_v34   ;;  %509 = vst [vmem:[%s679_s2 + $0x38] sm:$0xff] %v501_v35  }
 0x103   :  { %504 = vst [vmem:[%s679_s2 + $0x10] sm:$0xff] %v476_v38   ;;  %508 = vst [vmem:[%s679_s2 + $0x30] sm:$0xff] %v496_v39  }

// kernel: sage_forward_pallas.11
= control target key start
LH: loop header
LB: loop body
LE: loop exit
PB: predicated region body
PF: predicated region fallthrough
CT: control target
= control target key end

     0   :  { %s1101_s21 = smov 0   ;;  %s1103_s22 = smov 0   ;;  %s1231_s0 = inlined_call_operand.vmem [shape: bf16[128,128], index: 0, kind: input, shape index: {}]   ;;  %s1232_s1 = inlined_call_operand.vmem [shape: bf16[128,128], index: 1, kind: input, shape index: {}]   ;;  %s1233_s2 = inlined_call_operand.vmem [shape: bf16[128,128], index: 2, kind: input, shape index: {}]   ;;  %s1234_s3 = inlined_call_operand.vmem [shape: bf16[128,128], index: 3, kind: input, shape index: {}]   ;;  %s1235_s4 = inlined_call_operand.vmem [shape: f32[128,1], index: 4, kind: input, shape index: {}]   ;;  %s1236_s5 = inlined_call_operand.vmem [shape: f32[1,128], index: 5, kind: input, shape index: {}]   ;;  %s1237_s6 = inlined_call_operand.vmem [shape: f32[128,128], index: 6, kind: output, shape index: {}]  }
   0x1   :  { %s1105_s23 = smov 0  }
   0x2 LB: > { %s28_s24 = sadd.s32 1, %s1059_s22  ;;  %p882_p0 = scmp.ge.s32.totalorder %s1063_s23, 1  ;;  %s1063_s23 = sphi %s1105_s23, %s16_s23   ;;  %s1059_s22 = sphi %s1103_s22, %s1239_s22   ;;  %s1055_s21 = sphi %s1101_s21, %s1238_s21  }
   0x3   : > { %p30_p1 = scmp.ge.s32.totalorder %s28_s24, 2  ;;  %p252_p2 = scmp.lt.s32.totalorder %s1063_s23, 3 }
   0x5   : > { %s1241_s24 = smov (%p30_p1, %s28_s24), 0  ;;  %p253_p3 = pnand %p882_p0, %p252_p2 }
   0x6   : > { %v1017_v0 = vld [vmem:[%s1232_s1] sm:$0xff] (!%p253_p3)   ;;  %s883_s27 = sshll.u32 (!%p253_p3), %s1055_s21, 3  ;;  %v1019_v2 = vld [vmem:[%s1232_s1 + $0x8] sm:$0xff] (!%p253_p3)   ;;  %v1021_v4 = vld [vmem:[%s1232_s1 + $0x10] sm:$0xff] (!%p253_p3)   ;;  %v1065_v6 = vmov (!%p253_p3), 0  }
   0x7   : > { %256 = sbr.rel (%p253_p3) target bundleno = 269 (0x10d), region = 44  ;;  %v1018_v1 = vld [vmem:[%s1234_s3] sm:$0xff] (!%p253_p3)   ;;  %p296_p4 = scmp.lt.s32.totalorder (!%p253_p3), %s883_s27, 15  ;;  %942 = vmatprep.subr.bf16.mxu0 (!%p253_p3), %v1017_v0  ;;  %v1020_v3 = vld [vmem:[%s1234_s3 + $0x8] sm:$0xff] (!%p253_p3)   ;;  %v1022_v5 = vld [vmem:[%s1234_s3 + $0x10] sm:$0xff] (!%p253_p3)   ;;  %1016 = vset.pattern.permute.xlu1 (!%p253_p3), %v1065_v6 }
   0x8   : > { %966 = vmatprep.subr.bf16.mxu1 (!%p253_p3), %v1018_v1  ;;  %943 = vmatpush3.bf16.msra.mxu0 (!%p253_p3), %v1017_v0  ;;  %v1023_v7 = vld [vmem:[%s1232_s1 + $0x18] sm:$0xff] (!%p253_p3)   ;;  %v1025_v9 = vld [vmem:[%s1232_s1 + $0x20] sm:$0xff] (!%p253_p3)   ;;  %v1027_v11 = vld [vmem:[%s1232_s1 + $0x28] sm:$0xff] (!%p253_p3)  }
   0x9   : > { %967 = vmatpush3.bf16.msra.mxu1 (!%p253_p3), %v1018_v1  ;;  %944 = vmatprep.subr.bf16.mxu0 (!%p253_p3), %v1019_v2  ;;  %v1024_v8 = vld [vmem:[%s1234_s3 + $0x18] sm:$0xff] (!%p253_p3)   ;;  %v1026_v10 = vld [vmem:[%s1234_s3 + $0x20] sm:$0xff] (!%p253_p3)   ;;  %v1028_v12 = vld [vmem:[%s1234_s3 + $0x28] sm:$0xff] (!%p253_p3)  }
   0xa   : > { %968 = vmatprep.subr.bf16.mxu1 (!%p253_p3), %v1020_v3  ;;  %1015 = vset.pattern.permute.xlu0 (!%p253_p3), %v1065_v6  ;;  %v1029_v15 = vld [vmem:[%s1232_s1 + $0x30] sm:$0xff] (!%p253_p3)   ;;  %v1031_v17 = vld [vmem:[%s1232_s1 + $0x38] sm:$0xff] (!%p253_p3)   ;;  %v915_v43 = vld [vmem:[%s1236_s5] ss:$0 sm:$0xff] (!%p253_p3) }
   0xb   : > { %v1030_v16 = vld [vmem:[%s1234_s3 + $0x30] sm:$0xff] (!%p253_p3)   ;;  %v1032_v20 = vld [vmem:[%s1234_s3 + $0x38] sm:$0xff] (!%p253_p3)  }
   0xc   : > { %945 = vmatpush3.bf16.msra.mxu0 (!%p253_p3), %v1019_v2 }
   0xd   : > { %969 = vmatpush3.bf16.msra.mxu1 (!%p253_p3), %v1020_v3  ;;  %946 = vmatprep.subr.bf16.mxu0 (!%p253_p3), %v1021_v4 }
   0xe   : > { %s1243_s27 = smov (!%p296_p4, %s883_s27), 15  ;;  %970 = vmatprep.subr.bf16.mxu1 %v1022_v5 }
   0xf   : > { %s884_s18 = sshll.u32 %s1243_s27, 2  ;;  %s888_s13 = sshll.u32 %s1243_s27, 3 }
  0x10   : > { %947 = vmatpush3.bf16.msra.mxu0 %v1021_v4  ;;  %s1155_s29 = scalar_lea.vmem %s1231_s0, %s884_s18  ;;  %s1163_s10 = scalar_lea.vmem %s1233_s2, %s884_s18 }
  0x11   : > { %971 = vmatpush3.bf16.msra.mxu1 %v1022_v5  ;;  %948 = vmatprep.subr.bf16.mxu0 %v1023_v7  ;;  %v1033_v13 = vld [vmem:[%s1155_s29] sm:$0xff]   ;;  %s1182_s20 = scalar_lea.vmem %s1235_s4, %s888_s13  ;;  %v1035_v23 = vld [vmem:[%s1155_s29 + $0x8] sm:$0xff]   ;;  %v1037_v26 = vld [vmem:[%s1155_s29 + $0x10] sm:$0xff]   ;;  %s1212_s9 = scalar_lea.vmem %s1237_s6, %s888_s13 }
  0x12   : > { %972 = vmatprep.subr.bf16.mxu1 %v1024_v8  ;;  %v1034_v14 = vld [vmem:[%s1163_s10] sm:$0xff]   ;;  %958 = vmatprep.mubr.bf16.mxu0 %v1033_v13  ;;  %v691_v18 = vld [vmem:[%s1182_s20 + $0x10] sm:$0xff]  ;;  %v692_v21 = vld [vmem:[%s1182_s20 + $0x18] sm:$0xff] }
  0x13   : > { %982 = vmatprep.mubr.bf16.mxu1 %v1034_v14  ;;  %v689_v19 = vld [vmem:[%s1182_s20] sm:$0xff]  ;;  %717 = vperm.xlu1 %1016, %v691_v18   ;;  %v690_v22 = vld [vmem:[%s1182_s20 + $0x8] sm:$0xff]  ;;  %v1038_v28 = vld [vmem:[%s1163_s10 + $0x10] sm:$0xff]  }
  0x14   : > { %949 = vmatpush3.bf16.msra.mxu0 %v1023_v7  ;;  %707 = vperm.xlu0 %1015, %v689_v19   ;;  %v694_v24 = vld [vmem:[%s1182_s20 + $0x28] sm:$0xff]  ;;  %v693_v27 = vld [vmem:[%s1182_s20 + $0x20] sm:$0xff]  ;;  %v696_v29 = vld [vmem:[%s1182_s20 + $0x38] sm:$0xff] }
  0x15   : > { %973 = vmatpush3.bf16.msra.mxu1 %v1024_v8  ;;  %950 = vmatprep.subr.bf16.mxu0 %v1025_v9  ;;  %v1036_v25 = vld [vmem:[%s1163_s10 + $0x8] sm:$0xff]   ;;  %v695_v30 = vld [vmem:[%s1182_s20 + $0x30] sm:$0xff]  ;;  %v1039_v31 = vld [vmem:[%s1155_s29 + $0x18] sm:$0xff]  }
  0x16   : > { %974 = vmatprep.subr.bf16.mxu1 %v1026_v10  ;;  %v1040_v32 = vld [vmem:[%s1163_s10 + $0x18] sm:$0xff]  }
  0x17   : > { %722 = vperm.xlu1 %1016, %v692_v21  }
  0x18   : > { %951 = vmatpush3.bf16.msra.mxu0 %v1025_v9  ;;  %712 = vperm.xlu0 %1015, %v690_v22  }
  0x19   : > { %975 = vmatpush3.bf16.msra.mxu1 %v1026_v10  ;;  %952 = vmatprep.subr.bf16.mxu0 %v1027_v11 }
  0x1a   : > { %976 = vmatprep.subr.bf16.mxu1 %v1028_v12 }
  0x1b   : > { %732 = vperm.xlu1 %1016, %v694_v24  }
  0x1c   : > { %953 = vmatpush3.bf16.msra.mxu0 %v1027_v11  ;;  %727 = vperm.xlu0 %1015, %v693_v27  }
  0x1d   : > { %977 = vmatpush3.bf16.msra.mxu1 %v1028_v12  ;;  %954 = vmatprep.subr.bf16.mxu0 %v1029_v15 }
  0x1e   : > { %978 = vmatprep.subr.bf16.mxu1 %v1030_v16 }
  0x1f   : > { %742 = vperm.xlu1 %1016, %v696_v29  }
  0x20   : > { %955 = vmatpush3.bf16.msra.mxu0 %v1029_v15  ;;  %737 = vperm.xlu0 %1015, %v695_v30  }
  0x21   : > { %979 = vmatpush3.bf16.msra.mxu1 %v1030_v16  ;;  %956 = vmatprep.subr.bf16.mxu0 %v1031_v17 }
  0x22   : > { %980 = vmatprep.subr.bf16.mxu1 %v1032_v20 }
  0x24   : > { %957 = vmatpush3.bf16.msra.mxu0 %v1031_v17 }
  0x25   : > { %981 = vmatpush3.bf16.msra.mxu1 %v1032_v20 }
  0x27   : > { %959 = vmatmul.mubr.bf16.vlgmr.msra.gmra.mrb[0].mxu0 %v1035_v23 }
  0x28   : > { %983 = vmatmul.mubr.bf16.vlgmr.msra.gmra.mrb[0].mxu1 %v1036_v25  ;;  %962 = vmatprep.mubr.bf16.mxu0 %v1037_v26 }
  0x29   : > { %986 = vmatprep.mubr.bf16.mxu1 %v1038_v28 }
  0x2f   : > { %963 = vmatmul.mubr.bf16.gmra.mrb[4].mxu0 %v1039_v31 }
  0x30   : > { %987 = vmatmul.mubr.bf16.gmra.mrb[4].mxu1 %v1040_v32 }
  0x92   : > { %v718_v33 = vpop.permute.xlu1 %717 }
  0x93   : > { %v708_v34 = vpop.permute.xlu0 %707 }
  0x96   : > { %v723_v35 = vpop.permute.xlu1 %722 }
  0x97   : > { %v713_v36 = vpop.permute.xlu0 %712 }
  0x9a   : > { %v733_v37 = vpop.permute.xlu1 %732 }
  0x9b   : > { %v728_v38 = vpop.permute.xlu0 %727 }
  0x9e   : > { %v743_v58 = vpop.permute.xlu1 %742 }
  0x9f   : > { %v738_v60 = vpop.permute.xlu0 %737 }
  0xfa   : > { %v960_v39 = vpop.f32.mrb[0].mxu0 }
  0xfb   : > { %v747_v40 = vmul.f32 %v960_v39, %v718_v33  ;;  %v984_v41 = vpop.f32.mrb[0].mxu1  ;;  %v478_v42 = vpop.f32.mrb[1].mxu0 }
  0xfc   : > { %v745_v44 = vmul.f32 %v708_v34, %v478_v42  ;;  %v658_v45 = vpop.f32.mrb[1].mxu1  ;;  %v961_v46 = vpop.f32.mrb[2].mxu0 }
  0xfd   : > { %v755_v47 = vadd.f32 %v984_v41, %v747_v40  ;;  %v748_v48 = vmul.f32 %v961_v46, %v723_v35  ;;  %v985_v49 = vpop.f32.mrb[2].mxu1  ;;  %v481_v50 = vpop.f32.mrb[3].mxu0 }
  0xfe   : > { %v753_v51 = vadd.f32 %v745_v44, %v658_v45  ;;  %v746_v52 = vmul.f32 %v713_v36, %v481_v50  ;;  %v661_v53 = vpop.f32.mrb[3].mxu1 }
  0xff   : > { %v770_v54 = vadd.f32 %v915_v43, %v755_v47  ;;  %v756_v55 = vadd.f32 %v985_v49, %v748_v48 }
 0x100   : > { %v768_v56 = vadd.f32 %v915_v43, %v753_v51  ;;  %v754_v57 = vadd.f32 %v746_v52, %v661_v53 }
 0x101   : > { %778 = vst [vmem:[%s1212_s9 + $0x10] sm:$0xff] %v770_v54  ;;  %v771_v59 = vadd.f32 %v915_v43, %v756_v55 }
 0x102   : > { %776 = vst [vmem:[%s1212_s9] sm:$0xff] %v768_v56  ;;  %v769_v61 = vadd.f32 %v915_v43, %v754_v57  ;;  %v964_v62 = vpop.f32.mrb[4].mxu0 }
 0x103   : > { %779 = vst [vmem:[%s1212_s9 + $0x18] sm:$0xff] %v771_v59  ;;  %v751_v63 = vmul.f32 %v964_v62, %v738_v60  ;;  %v988_v0 = vpop.f32.mrb[4].mxu1  ;;  %v494_v1 = vpop.f32.mrb[5].mxu0 }
 0x104   : > { %777 = vst [vmem:[%s1212_s9 + $0x8] sm:$0xff] %v769_v61  ;;  %v749_v2 = vmul.f32 %v728_v38, %v494_v1  ;;  %v674_v3 = vpop.f32.mrb[5].mxu1  ;;  %v965_v4 = vpop.f32.mrb[6].mxu0 }
 0x105   : > { %v759_v5 = vadd.f32 %v988_v0, %v751_v63  ;;  %v752_v6 = vmul.f32 %v965_v4, %v743_v58  ;;  %v989_v7 = vpop.f32.mrb[6].mxu1  ;;  %v497_v8 = vpop.f32.mrb[7].mxu0 }
 0x106   : > { %v757_v9 = vadd.f32 %v749_v2, %v674_v3  ;;  %v750_v10 = vmul.f32 %v733_v37, %v497_v8  ;;  %v677_v11 = vpop.f32.mrb[7].mxu1 }
 0x107   : > { %v774_v12 = vadd.f32 %v915_v43, %v759_v5  ;;  %v760_v13 = vadd.f32 %v989_v7, %v752_v6 }
 0x108   : > { %v772_v14 = vadd.f32 %v915_v43, %v757_v9  ;;  %v758_v15 = vadd.f32 %v750_v10, %v677_v11 }
 0x109   : > { %782 = vst [vmem:[%s1212_s9 + $0x30] sm:$0xff] %v774_v12  ;;  %v775_v16 = vadd.f32 %v915_v43, %v760_v13 }
 0x10a   : > { %780 = vst [vmem:[%s1212_s9 + $0x20] sm:$0xff] %v772_v14  ;;  %v773_v17 = vadd.f32 %v915_v43, %v758_v15 }
 0x10b   : > { %783 = vst [vmem:[%s1212_s9 + $0x38] sm:$0xff] %v775_v16 }
 0x10c   : > { %781 = vst [vmem:[%s1212_s9 + $0x28] sm:$0xff] %v773_v17 }
 0x10d PF: > { %s16_s23 = sadd.s32 1, %s1063_s23   ;;  %s1238_s21 = smov %s1059_s22 }
 0x10e   : > { %p13_p5 = scmp.ge.s32.totalorder %s16_s23, 4   ;;  %s1239_s22 = smov %s1241_s24 }
 0x110   :  { %15 = sbr.rel (!%p13_p5) target bundleno = 2 (0x2), region = 89 }

</bundles_post_ra>
